<compile_context>
chip_gen: v7x
topology: tpu7x:2x2x1
jax: 0.10.0
libtpu: 0.0.40
codegen_flags: <defaults>
</compile_context>

<pallas_src>
import functools

import jax
import jax.numpy as jnp
from jax.experimental import pallas as pl
from jax.experimental.pallas import tpu as pltpu


def _attn_kernel(x_ref, wq_ref, bq_ref, wk_ref, bk_ref, wv_ref, bv_ref,
                 wo_ref, bo_ref, o_ref, ctx_ref, *,
                 heads, head_dim, inv_scale, batch_block, seq_len):
    """One grid step = `batch_block` batch elements.

    x_ref          : (Bb, N, D)    input tokens for this batch block
    wq/wk/wv_ref   : (D, H*Dh)     fused all-head projection weights (resident)
    bq/bk/bv_ref   : (1, H*Dh)     fused projection biases (resident)
    wo_ref         : (H*Dh, D)     fused output projection weight (resident)
    bo_ref         : (1, D)        output projection bias (resident)
    o_ref          : (Bb, N, D)    output block
    ctx_ref        : (Bb, N, H*Dh) f32 VMEM scratch for per-head context
    """
    Bb, N, Dh, H = batch_block, seq_len, head_dim, heads
    HD = H * Dh
    D = x_ref.shape[-1]
    M = Bb * N

    # Fold (batch, token) into the matmul row dimension. N is a multiple of 8
    # here so the reshape is a layout no-op.
    x = x_ref[...].reshape(M, D)

    # Fused all-head Q/K/V projections — contraction depth D, rows = Bb*N.
    q = jnp.dot(x, wq_ref[...], preferred_element_type=jnp.float32) + bq_ref[...]
    k = jnp.dot(x, wk_ref[...], preferred_element_type=jnp.float32) + bk_ref[...]
    v = jnp.dot(x, wv_ref[...], preferred_element_type=jnp.float32) + bv_ref[...]

    # Scale q (M*HD elements) instead of the (N, N) score matrices.
    q = (q * inv_scale).reshape(Bb, N, HD)
    k = k.reshape(Bb, N, HD)
    v = v.reshape(Bb, N, HD)

    # Per-head attention (unrolled; H is small). Scores / P@V are batched
    # over the Bb leading dimension via 3-D einsums (no explicit k.T).
    for h in range(H):
        sl = slice(h * Dh, (h + 1) * Dh)
        qh = q[:, :, sl]                                        # (Bb, N, Dh)
        kh = k[:, :, sl]
        vh = v[:, :, sl]

        s = jnp.einsum('bqd,bkd->bqk', qh, kh,
                       preferred_element_type=jnp.float32)      # (Bb, N, N)
        s = s - jnp.max(s, axis=-1, keepdims=True)
        p = jnp.exp(s)
        denom = jnp.sum(p, axis=-1, keepdims=True)              # (Bb, N, 1)

        ctx_h = jnp.einsum('bqk,bkd->bqd', p, vh,
                           preferred_element_type=jnp.float32)  # (Bb, N, Dh)
        # Deferred normalisation: scale the (N, Dh) context, not the (N, N) P.
        # Exact reciprocal keeps 1e-4 parity with the f32 reference.
        ctx_ref[:, :, sl] = ctx_h * pl.reciprocal(denom, approx=False)

    # Fused output projection over all heads: (M, H*Dh) x (H*Dh, D).
    ctx = ctx_ref[...].reshape(M, HD)
    out = jnp.dot(ctx, wo_ref[...], preferred_element_type=jnp.float32) + bo_ref[...]
    o_ref[...] = out.reshape(Bb, N, D).astype(o_ref.dtype)


def prepare_params(params, heads):
    """One-time layout prep: flatten LinearGeneral weights to kernel layout."""
    D = params["wq"].shape[0]
    Dh = D // heads
    HD = heads * Dh
    return {
        "wq": params["wq"].reshape(D, HD),     # (D, H, Dh) -> (D, H*Dh)
        "bq": params["bq"].reshape(1, HD),     # (H, Dh)    -> (1, H*Dh)
        "wk": params["wk"].reshape(D, HD),
        "bk": params["bk"].reshape(1, HD),
        "wv": params["wv"].reshape(D, HD),
        "bv": params["bv"].reshape(1, HD),
        "wo": params["wo"].reshape(HD, D),     # (H, Dh, D) -> (H*Dh, D)
        "bo": params["bo"].reshape(1, D),      # (D,)       -> (1, D)
    }


def _pick_batch_block(B, N, target_rows=256):
    """Largest divisor of B whose folded row count Bb*N stays near the MXU
    row target (256 on v6e/v7x)."""
    bb = 1
    for cand in range(1, B + 1):
        if B % cand == 0 and cand * N <= max(target_rows, N):
            bb = cand
    return bb


def self_attention_pallas(x, prep, heads, *, batch_block=None,
                          single_buffer_weights=True, interpret=False):
    """x: (B, N, D) float32.  prep: output of prepare_params()."""
    B, N, D = x.shape
    Dh = D // heads
    HD = heads * Dh
    inv_scale = 1.0 / (float(Dh) ** 0.5)

    if batch_block is None:
        batch_block = _pick_batch_block(B, N)
    assert B % batch_block == 0, "batch_block must divide B"
    grid_b = B // batch_block
    M = batch_block * N

    kernel = functools.partial(_attn_kernel, heads=heads, head_dim=Dh,
                               inv_scale=inv_scale, batch_block=batch_block,
                               seq_len=N)

    # VMEM budget: resident weights (+biases), pipelined x/out blocks, the
    # context scratch and the live q/k/v + per-head score intermediates.
    weight_bytes = (3 * D * HD + HD * D + 3 * HD + D) * 4
    block_bytes = 2 * 2 * M * D * x.dtype.itemsize            # x + out, 2 bufs
    scratch_bytes = M * HD * 4
    live_bytes = (3 * M * HD + 2 * batch_block * N * N + M * D) * 4
    vmem_est = (weight_bytes * (1 if single_buffer_weights else 2)
                + block_bytes + scratch_bytes + live_bytes)
    # Headroom; floor at the usual 32 MiB scoped default, cap at 128 MiB.
    # (On v7x — 64 MiB physical — shrink batch_block before weight residency.)
    vmem_limit = int(min(max(2 * vmem_est, 32 * 1024 * 1024), 128 * 1024 * 1024))

    def build(use_single_buffer):
        pm = pl.Buffered(1) if use_single_buffer else None

        def w_spec(shape):
            # Resident block: full extent, constant index map -> single DMA.
            return pl.BlockSpec(shape, lambda b: (0, 0), pipeline_mode=pm)

        grid_spec = pltpu.PrefetchScalarGridSpec(
            num_scalar_prefetch=0,
            grid=(grid_b,),
            in_specs=[
                pl.BlockSpec((batch_block, N, D), lambda b: (b, 0, 0)),   # x
                w_spec((D, HD)), w_spec((1, HD)),                         # Wq, bq
                w_spec((D, HD)), w_spec((1, HD)),                         # Wk, bk
                w_spec((D, HD)), w_spec((1, HD)),                         # Wv, bv
                w_spec((HD, D)), w_spec((1, D)),                          # Wo, bo
            ],
            out_specs=pl.BlockSpec((batch_block, N, D), lambda b: (b, 0, 0)),
            scratch_shapes=[pltpu.VMEM((batch_block, N, HD), jnp.float32)],
        )
        return pl.pallas_call(
            kernel,
            out_shape=jax.ShapeDtypeStruct((B, N, D), x.dtype),
            grid_spec=grid_spec,
            compiler_params=pltpu.CompilerParams(
                dimension_semantics=("parallel",),
                vmem_limit_bytes=vmem_limit),
            interpret=interpret,
        )

    args = (x, prep["wq"], prep["bq"], prep["wk"], prep["bk"],
            prep["wv"], prep["bv"], prep["wo"], prep["bo"])

    if single_buffer_weights:
        try:
            return build(True)(*args)
        except Exception:
            # Fall back to default (double-buffered) resident weights if this
            # JAX build rejects pipeline_mode=pl.Buffered(1).
            pass
    return build(False)(*args)


def self_attention_ref(x, params, heads):
    """Pure-JAX reference matching the PyTorch forward exactly."""
    Dh = x.shape[-1] // heads
    scale = float(Dh) ** 0.5
    q = jnp.tensordot(x, params["wq"], axes=([2], [0])) + params["bq"]  # (B,N,H,Dh)
    k = jnp.tensordot(x, params["wk"], axes=([2], [0])) + params["bk"]
    v = jnp.tensordot(x, params["wv"], axes=([2], [0])) + params["bv"]
    q = jnp.transpose(q, (0, 2, 1, 3))
    k = jnp.transpose(k, (0, 2, 1, 3))
    v = jnp.transpose(v, (0, 2, 1, 3))
    attn = jnp.einsum("bhqd,bhkd->bhqk", q, k) / scale
    attn = jax.nn.softmax(attn, axis=-1)
    out = jnp.einsum("bhqk,bhkd->bhqd", attn, v)
    out = jnp.transpose(out, (0, 2, 1, 3))                              # (B,N,H,Dh)
    out = jnp.tensordot(out, params["wo"], axes=([2, 3], [0, 1])) + params["bo"]
    return out


def init_params(key, in_dim, heads):
    """Deterministic init matching the module: randn weights, zero biases."""
    Dh = in_dim // heads
    k1, k2, k3, k4 = jax.random.split(key, 4)
    return {
        "wq": jax.random.normal(k1, (in_dim, heads, Dh), jnp.float32),
        "bq": jnp.zeros((heads, Dh), jnp.float32),
        "wk": jax.random.normal(k2, (in_dim, heads, Dh), jnp.float32),
        "bk": jnp.zeros((heads, Dh), jnp.float32),
        "wv": jax.random.normal(k3, (in_dim, heads, Dh), jnp.float32),
        "bv": jnp.zeros((heads, Dh), jnp.float32),
        "wo": jax.random.normal(k4, (heads, Dh, in_dim), jnp.float32),
        "bo": jnp.zeros((in_dim,), jnp.float32),
    }


if __name__ == "__main__":
    B, N, D, H = 2, 8, 32, 4   # batch, seq, embed, heads  (head_dim = 8)

    key = jax.random.PRNGKey(0)
    kx, kp = jax.random.split(key)
    x = jax.random.normal(kx, (B, N, D), jnp.float32)
    params = init_params(kp, D, H)

    prep = prepare_params(params, H)            # one-time layout prep
    out = self_attention_pallas(x, prep, H)
    out = jax.block_until_ready(out)

    ref = self_attention_ref(x, params, H)
    assert out.shape == (B, N, D)
    assert jnp.allclose(out, ref, atol=1e-4, rtol=1e-4), "mismatch vs reference"

    print("KERNEL_OK")
</pallas_src>

<mosaic_0001>
module attributes {stable_mosaic.version = 11 : i64} {
  func.func @_attn_kernel(%arg0: i32, %arg1: memref<2x8x32xf32, #tpu.memory_space<vmem>>, %arg2: memref<32x32xf32, #tpu.memory_space<vmem>>, %arg3: memref<1x32xf32, #tpu.memory_space<vmem>>, %arg4: memref<32x32xf32, #tpu.memory_space<vmem>>, %arg5: memref<1x32xf32, #tpu.memory_space<vmem>>, %arg6: memref<32x32xf32, #tpu.memory_space<vmem>>, %arg7: memref<1x32xf32, #tpu.memory_space<vmem>>, %arg8: memref<32x32xf32, #tpu.memory_space<vmem>>, %arg9: memref<1x32xf32, #tpu.memory_space<vmem>>, %arg10: memref<2x8x32xf32, #tpu.memory_space<vmem>>, %arg11: memref<2x8x32xf32, #tpu.memory_space<vmem>>) attributes {dimension_semantics = [#tpu.dimension_semantics<parallel>], iteration_bounds = array<i64: 1>, scalar_prefetch = 0 : i64, scratch_operands = 1 : i64, tpu.core_type = #tpu.core_type<tc>, window_params = [{transform_indices = @transform_0, window_bounds = array<i64: 2, 8, 32>}, {pipeline_mode = #tpu.pipeline_mode<synchronous>, transform_indices = @transform_1, window_bounds = array<i64: 32, 32>}, {pipeline_mode = #tpu.pipeline_mode<synchronous>, transform_indices = @transform_2, window_bounds = array<i64: 1, 32>}, {pipeline_mode = #tpu.pipeline_mode<synchronous>, transform_indices = @transform_3, window_bounds = array<i64: 32, 32>}, {pipeline_mode = #tpu.pipeline_mode<synchronous>, transform_indices = @transform_4, window_bounds = array<i64: 1, 32>}, {pipeline_mode = #tpu.pipeline_mode<synchronous>, transform_indices = @transform_5, window_bounds = array<i64: 32, 32>}, {pipeline_mode = #tpu.pipeline_mode<synchronous>, transform_indices = @transform_6, window_bounds = array<i64: 1, 32>}, {pipeline_mode = #tpu.pipeline_mode<synchronous>, transform_indices = @transform_7, window_bounds = array<i64: 32, 32>}, {pipeline_mode = #tpu.pipeline_mode<synchronous>, transform_indices = @transform_8, window_bounds = array<i64: 1, 32>}, {transform_indices = @transform_9, window_bounds = array<i64: 2, 8, 32>}]} {
    %c0 = arith.constant 0 : index
    %c0_0 = arith.constant 0 : index
    %c0_1 = arith.constant 0 : index
    %0 = vector.load %arg1[%c0, %c0_0, %c0_1] : memref<2x8x32xf32, #tpu.memory_space<vmem>>, vector<2x8x32xf32>
    %1 = vector.shape_cast %0 : vector<2x8x32xf32> to vector<16x32xf32>
    %c0_2 = arith.constant 0 : index
    %c0_3 = arith.constant 0 : index
    %2 = vector.load %arg2[%c0_2, %c0_3] : memref<32x32xf32, #tpu.memory_space<vmem>>, vector<32x32xf32>
    %cst = arith.constant dense<0.000000e+00> : vector<16x32xf32>
    %3 = tpu.matmul %1, %2, %cst {dimension_numbers = #tpu.dot_dimension_numbers<[1], [0], [0], [1], [0, 0, 1, 1], [], []>} : vector<16x32xf32>, vector<32x32xf32>, vector<16x32xf32> -> vector<16x32xf32>
    %c0_4 = arith.constant 0 : index
    %c0_5 = arith.constant 0 : index
    %4 = vector.load %arg3[%c0_4, %c0_5] : memref<1x32xf32, #tpu.memory_space<vmem>>, vector<1x32xf32>
    %5 = vector.broadcast %4 : vector<1x32xf32> to vector<16x32xf32>
    %6 = arith.addf %3, %5 : vector<16x32xf32>
    %c0_6 = arith.constant 0 : index
    %c0_7 = arith.constant 0 : index
    %7 = vector.load %arg4[%c0_6, %c0_7] : memref<32x32xf32, #tpu.memory_space<vmem>>, vector<32x32xf32>
    %cst_8 = arith.constant dense<0.000000e+00> : vector<16x32xf32>
    %8 = tpu.matmul %1, %7, %cst_8 {dimension_numbers = #tpu.dot_dimension_numbers<[1], [0], [0], [1], [0, 0, 1, 1], [], []>} : vector<16x32xf32>, vector<32x32xf32>, vector<16x32xf32> -> vector<16x32xf32>
    %c0_9 = arith.constant 0 : index
    %c0_10 = arith.constant 0 : index
    %9 = vector.load %arg5[%c0_9, %c0_10] : memref<1x32xf32, #tpu.memory_space<vmem>>, vector<1x32xf32>
    %10 = vector.broadcast %9 : vector<1x32xf32> to vector<16x32xf32>
    %11 = arith.addf %8, %10 : vector<16x32xf32>
    %c0_11 = arith.constant 0 : index
    %c0_12 = arith.constant 0 : index
    %12 = vector.load %arg6[%c0_11, %c0_12] : memref<32x32xf32, #tpu.memory_space<vmem>>, vector<32x32xf32>
    %cst_13 = arith.constant dense<0.000000e+00> : vector<16x32xf32>
    %13 = tpu.matmul %1, %12, %cst_13 {dimension_numbers = #tpu.dot_dimension_numbers<[1], [0], [0], [1], [0, 0, 1, 1], [], []>} : vector<16x32xf32>, vector<32x32xf32>, vector<16x32xf32> -> vector<16x32xf32>
    %c0_14 = arith.constant 0 : index
    %c0_15 = arith.constant 0 : index
    %14 = vector.load %arg7[%c0_14, %c0_15] : memref<1x32xf32, #tpu.memory_space<vmem>>, vector<1x32xf32>
    %15 = vector.broadcast %14 : vector<1x32xf32> to vector<16x32xf32>
    %16 = arith.addf %13, %15 : vector<16x32xf32>
    %cst_16 = arith.constant 0.353553385 : f32
    %17 = vector.broadcast %cst_16 : f32 to vector<16x32xf32>
    %18 = arith.mulf %6, %17 : vector<16x32xf32>
    %19 = vector.shape_cast %18 : vector<16x32xf32> to vector<2x8x32xf32>
    %20 = vector.shape_cast %11 : vector<16x32xf32> to vector<2x8x32xf32>
    %21 = vector.shape_cast %16 : vector<16x32xf32> to vector<2x8x32xf32>
    %22 = vector.extract_strided_slice %19 {offsets = [0, 0, 0], sizes = [2, 8, 8], strides = [1, 1, 1]} : vector<2x8x32xf32> to vector<2x8x8xf32>
    %23 = vector.extract_strided_slice %20 {offsets = [0, 0, 0], sizes = [2, 8, 8], strides = [1, 1, 1]} : vector<2x8x32xf32> to vector<2x8x8xf32>
    %24 = vector.extract_strided_slice %21 {offsets = [0, 0, 0], sizes = [2, 8, 8], strides = [1, 1, 1]} : vector<2x8x32xf32> to vector<2x8x8xf32>
    "tpu.trace_start"() <{level = 10 : i32, message = "bqd,bkd->bqk"}> : () -> ()
    %cst_17 = arith.constant dense<0.000000e+00> : vector<2x8x8xf32>
    %25 = tpu.matmul %22, %23, %cst_17 {dimension_numbers = #tpu.dot_dimension_numbers<[2], [2], [1], [1], [0, 0, 0, 1, 1, 1], [0], [0]>} : vector<2x8x8xf32>, vector<2x8x8xf32>, vector<2x8x8xf32> -> vector<2x8x8xf32>
    "tpu.trace_stop"() : () -> ()
    %cst_18 = arith.constant dense<0xFF800000> : vector<2x8xf32>
    %26 = vector.multi_reduction <maximumf>, %25, %cst_18 [2] : vector<2x8x8xf32> to vector<2x8xf32>
    %27 = vector.shape_cast %26 : vector<2x8xf32> to vector<2x8x1xf32>
    %28 = vector.broadcast %27 : vector<2x8x1xf32> to vector<2x8x8xf32>
    %29 = arith.subf %25, %28 : vector<2x8x8xf32>
    %30 = math.exp %29 : vector<2x8x8xf32>
    %cst_19 = arith.constant dense<0.000000e+00> : vector<2x8xf32>
    %31 = vector.multi_reduction <add>, %30, %cst_19 [2] : vector<2x8x8xf32> to vector<2x8xf32>
    %32 = vector.shape_cast %31 : vector<2x8xf32> to vector<2x8x1xf32>
    "tpu.trace_start"() <{level = 10 : i32, message = "bqk,bkd->bqd"}> : () -> ()
    %cst_20 = arith.constant dense<0.000000e+00> : vector<2x8x8xf32>
    %33 = tpu.matmul %30, %24, %cst_20 {dimension_numbers = #tpu.dot_dimension_numbers<[2], [1], [1], [2], [0, 0, 0, 1, 1, 2], [0], [0]>} : vector<2x8x8xf32>, vector<2x8x8xf32>, vector<2x8x8xf32> -> vector<2x8x8xf32>
    "tpu.trace_stop"() : () -> ()
    %34 = tpu.reciprocal %32 : vector<2x8x1xf32> -> vector<2x8x1xf32>
    %35 = vector.broadcast %34 : vector<2x8x1xf32> to vector<2x8x8xf32>
    %36 = arith.mulf %33, %35 : vector<2x8x8xf32>
    %c0_21 = arith.constant 0 : index
    %c0_22 = arith.constant 0 : index
    %c0_23 = arith.constant 0 : index
    %37 = vector.load %arg11[%c0_21, %c0_22, %c0_23] : memref<2x8x32xf32, #tpu.memory_space<vmem>>, vector<2x8x8xf32>
    tpu.vector_store %arg11[%c0_21, %c0_22, %c0_23], %36 {strides = array<i32>} : memref<2x8x32xf32, #tpu.memory_space<vmem>>, vector<2x8x8xf32>,
    %38 = vector.extract_strided_slice %19 {offsets = [0, 0, 8], sizes = [2, 8, 8], strides = [1, 1, 1]} : vector<2x8x32xf32> to vector<2x8x8xf32>
    %39 = vector.extract_strided_slice %20 {offsets = [0, 0, 8], sizes = [2, 8, 8], strides = [1, 1, 1]} : vector<2x8x32xf32> to vector<2x8x8xf32>
    %40 = vector.extract_strided_slice %21 {offsets = [0, 0, 8], sizes = [2, 8, 8], strides = [1, 1, 1]} : vector<2x8x32xf32> to vector<2x8x8xf32>
    "tpu.trace_start"() <{level = 10 : i32, message = "bqd,bkd->bqk"}> : () -> ()
    %cst_24 = arith.constant dense<0.000000e+00> : vector<2x8x8xf32>
    %41 = tpu.matmul %38, %39, %cst_24 {dimension_numbers = #tpu.dot_dimension_numbers<[2], [2], [1], [1], [0, 0, 0, 1, 1, 1], [0], [0]>} : vector<2x8x8xf32>, vector<2x8x8xf32>, vector<2x8x8xf32> -> vector<2x8x8xf32>
    "tpu.trace_stop"() : () -> ()
    %cst_25 = arith.constant dense<0xFF800000> : vector<2x8xf32>
    %42 = vector.multi_reduction <maximumf>, %41, %cst_25 [2] : vector<2x8x8xf32> to vector<2x8xf32>
    %43 = vector.shape_cast %42 : vector<2x8xf32> to vector<2x8x1xf32>
    %44 = vector.broadcast %43 : vector<2x8x1xf32> to vector<2x8x8xf32>
    %45 = arith.subf %41, %44 : vector<2x8x8xf32>
    %46 = math.exp %45 : vector<2x8x8xf32>
    %cst_26 = arith.constant dense<0.000000e+00> : vector<2x8xf32>
    %47 = vector.multi_reduction <add>, %46, %cst_26 [2] : vector<2x8x8xf32> to vector<2x8xf32>
    %48 = vector.shape_cast %47 : vector<2x8xf32> to vector<2x8x1xf32>
    "tpu.trace_start"() <{level = 10 : i32, message = "bqk,bkd->bqd"}> : () -> ()
    %cst_27 = arith.constant dense<0.000000e+00> : vector<2x8x8xf32>
    %49 = tpu.matmul %46, %40, %cst_27 {dimension_numbers = #tpu.dot_dimension_numbers<[2], [1], [1], [2], [0, 0, 0, 1, 1, 2], [0], [0]>} : vector<2x8x8xf32>, vector<2x8x8xf32>, vector<2x8x8xf32> -> vector<2x8x8xf32>
    "tpu.trace_stop"() : () -> ()
    %50 = tpu.reciprocal %48 : vector<2x8x1xf32> -> vector<2x8x1xf32>
    %51 = vector.broadcast %50 : vector<2x8x1xf32> to vector<2x8x8xf32>
    %52 = arith.mulf %49, %51 : vector<2x8x8xf32>
    %c0_28 = arith.constant 0 : index
    %c0_29 = arith.constant 0 : index
    %c8 = arith.constant 8 : index
    %53 = vector.load %arg11[%c0_28, %c0_29, %c8] : memref<2x8x32xf32, #tpu.memory_space<vmem>>, vector<2x8x8xf32>
    tpu.vector_store %arg11[%c0_28, %c0_29, %c8], %52 {strides = array<i32>} : memref<2x8x32xf32, #tpu.memory_space<vmem>>, vector<2x8x8xf32>,
    %54 = vector.extract_strided_slice %19 {offsets = [0, 0, 16], sizes = [2, 8, 8], strides = [1, 1, 1]} : vector<2x8x32xf32> to vector<2x8x8xf32>
    %55 = vector.extract_strided_slice %20 {offsets = [0, 0, 16], sizes = [2, 8, 8], strides = [1, 1, 1]} : vector<2x8x32xf32> to vector<2x8x8xf32>
    %56 = vector.extract_strided_slice %21 {offsets = [0, 0, 16], sizes = [2, 8, 8], strides = [1, 1, 1]} : vector<2x8x32xf32> to vector<2x8x8xf32>
    "tpu.trace_start"() <{level = 10 : i32, message = "bqd,bkd->bqk"}> : () -> ()
    %cst_30 = arith.constant dense<0.000000e+00> : vector<2x8x8xf32>
    %57 = tpu.matmul %54, %55, %cst_30 {dimension_numbers = #tpu.dot_dimension_numbers<[2], [2], [1], [1], [0, 0, 0, 1, 1, 1], [0], [0]>} : vector<2x8x8xf32>, vector<2x8x8xf32>, vector<2x8x8xf32> -> vector<2x8x8xf32>
    "tpu.trace_stop"() : () -> ()
    %cst_31 = arith.constant dense<0xFF800000> : vector<2x8xf32>
    %58 = vector.multi_reduction <maximumf>, %57, %cst_31 [2] : vector<2x8x8xf32> to vector<2x8xf32>
    %59 = vector.shape_cast %58 : vector<2x8xf32> to vector<2x8x1xf32>
    %60 = vector.broadcast %59 : vector<2x8x1xf32> to vector<2x8x8xf32>
    %61 = arith.subf %57, %60 : vector<2x8x8xf32>
    %62 = math.exp %61 : vector<2x8x8xf32>
    %cst_32 = arith.constant dense<0.000000e+00> : vector<2x8xf32>
    %63 = vector.multi_reduction <add>, %62, %cst_32 [2] : vector<2x8x8xf32> to vector<2x8xf32>
    %64 = vector.shape_cast %63 : vector<2x8xf32> to vector<2x8x1xf32>
    "tpu.trace_start"() <{level = 10 : i32, message = "bqk,bkd->bqd"}> : () -> ()
    %cst_33 = arith.constant dense<0.000000e+00> : vector<2x8x8xf32>
    %65 = tpu.matmul %62, %56, %cst_33 {dimension_numbers = #tpu.dot_dimension_numbers<[2], [1], [1], [2], [0, 0, 0, 1, 1, 2], [0], [0]>} : vector<2x8x8xf32>, vector<2x8x8xf32>, vector<2x8x8xf32> -> vector<2x8x8xf32>
    "tpu.trace_stop"() : () -> ()
    %66 = tpu.reciprocal %64 : vector<2x8x1xf32> -> vector<2x8x1xf32>
    %67 = vector.broadcast %66 : vector<2x8x1xf32> to vector<2x8x8xf32>
    %68 = arith.mulf %65, %67 : vector<2x8x8xf32>
    %c0_34 = arith.constant 0 : index
    %c0_35 = arith.constant 0 : index
    %c16 = arith.constant 16 : index
    %69 = vector.load %arg11[%c0_34, %c0_35, %c16] : memref<2x8x32xf32, #tpu.memory_space<vmem>>, vector<2x8x8xf32>
    tpu.vector_store %arg11[%c0_34, %c0_35, %c16], %68 {strides = array<i32>} : memref<2x8x32xf32, #tpu.memory_space<vmem>>, vector<2x8x8xf32>,
    %70 = vector.extract_strided_slice %19 {offsets = [0, 0, 24], sizes = [2, 8, 8], strides = [1, 1, 1]} : vector<2x8x32xf32> to vector<2x8x8xf32>
    %71 = vector.extract_strided_slice %20 {offsets = [0, 0, 24], sizes = [2, 8, 8], strides = [1, 1, 1]} : vector<2x8x32xf32> to vector<2x8x8xf32>
    %72 = vector.extract_strided_slice %21 {offsets = [0, 0, 24], sizes = [2, 8, 8], strides = [1, 1, 1]} : vector<2x8x32xf32> to vector<2x8x8xf32>
    "tpu.trace_start"() <{level = 10 : i32, message = "bqd,bkd->bqk"}> : () -> ()
    %cst_36 = arith.constant dense<0.000000e+00> : vector<2x8x8xf32>
    %73 = tpu.matmul %70, %71, %cst_36 {dimension_numbers = #tpu.dot_dimension_numbers<[2], [2], [1], [1], [0, 0, 0, 1, 1, 1], [0], [0]>} : vector<2x8x8xf32>, vector<2x8x8xf32>, vector<2x8x8xf32> -> vector<2x8x8xf32>
    "tpu.trace_stop"() : () -> ()
    %cst_37 = arith.constant dense<0xFF800000> : vector<2x8xf32>
    %74 = vector.multi_reduction <maximumf>, %73, %cst_37 [2] : vector<2x8x8xf32> to vector<2x8xf32>
    %75 = vector.shape_cast %74 : vector<2x8xf32> to vector<2x8x1xf32>
    %76 = vector.broadcast %75 : vector<2x8x1xf32> to vector<2x8x8xf32>
    %77 = arith.subf %73, %76 : vector<2x8x8xf32>
    %78 = math.exp %77 : vector<2x8x8xf32>
    %cst_38 = arith.constant dense<0.000000e+00> : vector<2x8xf32>
    %79 = vector.multi_reduction <add>, %78, %cst_38 [2] : vector<2x8x8xf32> to vector<2x8xf32>
    %80 = vector.shape_cast %79 : vector<2x8xf32> to vector<2x8x1xf32>
    "tpu.trace_start"() <{level = 10 : i32, message = "bqk,bkd->bqd"}> : () -> ()
    %cst_39 = arith.constant dense<0.000000e+00> : vector<2x8x8xf32>
    %81 = tpu.matmul %78, %72, %cst_39 {dimension_numbers = #tpu.dot_dimension_numbers<[2], [1], [1], [2], [0, 0, 0, 1, 1, 2], [0], [0]>} : vector<2x8x8xf32>, vector<2x8x8xf32>, vector<2x8x8xf32> -> vector<2x8x8xf32>
    "tpu.trace_stop"() : () -> ()
    %82 = tpu.reciprocal %80 : vector<2x8x1xf32> -> vector<2x8x1xf32>
    %83 = vector.broadcast %82 : vector<2x8x1xf32> to vector<2x8x8xf32>
    %84 = arith.mulf %81, %83 : vector<2x8x8xf32>
    %c0_40 = arith.constant 0 : index
    %c0_41 = arith.constant 0 : index
    %c24 = arith.constant 24 : index
    %85 = vector.load %arg11[%c0_40, %c0_41, %c24] : memref<2x8x32xf32, #tpu.memory_space<vmem>>, vector<2x8x8xf32>
    tpu.vector_store %arg11[%c0_40, %c0_41, %c24], %84 {strides = array<i32>} : memref<2x8x32xf32, #tpu.memory_space<vmem>>, vector<2x8x8xf32>,
    %c0_42 = arith.constant 0 : index
    %c0_43 = arith.constant 0 : index
    %c0_44 = arith.constant 0 : index
    %86 = vector.load %arg11[%c0_42, %c0_43, %c0_44] : memref<2x8x32xf32, #tpu.memory_space<vmem>>, vector<2x8x32xf32>
    %87 = vector.shape_cast %86 : vector<2x8x32xf32> to vector<16x32xf32>
    %c0_45 = arith.constant 0 : index
    %c0_46 = arith.constant 0 : index
    %88 = vector.load %arg8[%c0_45, %c0_46] : memref<32x32xf32, #tpu.memory_space<vmem>>, vector<32x32xf32>
    %cst_47 = arith.constant dense<0.000000e+00> : vector<16x32xf32>
    %89 = tpu.matmul %87, %88, %cst_47 {dimension_numbers = #tpu.dot_dimension_numbers<[1], [0], [0], [1], [0, 0, 1, 1], [], []>} : vector<16x32xf32>, vector<32x32xf32>, vector<16x32xf32> -> vector<16x32xf32>
    %c0_48 = arith.constant 0 : index
    %c0_49 = arith.constant 0 : index
    %90 = vector.load %arg9[%c0_48, %c0_49] : memref<1x32xf32, #tpu.memory_space<vmem>>, vector<1x32xf32>
    %91 = vector.broadcast %90 : vector<1x32xf32> to vector<16x32xf32>
    %92 = arith.addf %89, %91 : vector<16x32xf32>
    %93 = vector.shape_cast %92 : vector<16x32xf32> to vector<2x8x32xf32>
    %c0_50 = arith.constant 0 : index
    %c0_51 = arith.constant 0 : index
    %c0_52 = arith.constant 0 : index
    %94 = vector.load %arg10[%c0_50, %c0_51, %c0_52] : memref<2x8x32xf32, #tpu.memory_space<vmem>>, vector<2x8x32xf32>
    tpu.vector_store %arg10[%c0_50, %c0_51, %c0_52], %93 {strides = array<i32>} : memref<2x8x32xf32, #tpu.memory_space<vmem>>, vector<2x8x32xf32>,
    return
  }
  func.func @transform_0(%arg0: i32) -> (i32, i32, i32) {
    %c0_i32 = arith.constant 0 : i32
    %c0_i32_0 = arith.constant 0 : i32
    %c0_i32_1 = arith.constant 0 : i32
    return %arg0, %c0_i32, %c0_i32_0 : i32, i32, i32
  }
  func.func @transform_1(%arg0: i32) -> (i32, i32) {
    %c0_i32 = arith.constant 0 : i32
    %c0_i32_0 = arith.constant 0 : i32
    %c0_i32_1 = arith.constant 0 : i32
    return %c0_i32, %c0_i32_0 : i32, i32
  }
  func.func @transform_2(%arg0: i32) -> (i32, i32) {
    %c0_i32 = arith.constant 0 : i32
    %c0_i32_0 = arith.constant 0 : i32
    %c0_i32_1 = arith.constant 0 : i32
    return %c0_i32, %c0_i32_0 : i32, i32
  }
  func.func @transform_3(%arg0: i32) -> (i32, i32) {
    %c0_i32 = arith.constant 0 : i32
    %c0_i32_0 = arith.constant 0 : i32
    %c0_i32_1 = arith.constant 0 : i32
    return %c0_i32, %c0_i32_0 : i32, i32
  }
  func.func @transform_4(%arg0: i32) -> (i32, i32) {
    %c0_i32 = arith.constant 0 : i32
    %c0_i32_0 = arith.constant 0 : i32
    %c0_i32_1 = arith.constant 0 : i32
    return %c0_i32, %c0_i32_0 : i32, i32
  }
  func.func @transform_5(%arg0: i32) -> (i32, i32) {
    %c0_i32 = arith.constant 0 : i32
    %c0_i32_0 = arith.constant 0 : i32
    %c0_i32_1 = arith.constant 0 : i32
    return %c0_i32, %c0_i32_0 : i32, i32
  }
  func.func @transform_6(%arg0: i32) -> (i32, i32) {
    %c0_i32 = arith.constant 0 : i32
    %c0_i32_0 = arith.constant 0 : i32
    %c0_i32_1 = arith.constant 0 : i32
    return %c0_i32, %c0_i32_0 : i32, i32
  }
  func.func @transform_7(%arg0: i32) -> (i32, i32) {
    %c0_i32 = arith.constant 0 : i32
    %c0_i32_0 = arith.constant 0 : i32
    %c0_i32_1 = arith.constant 0 : i32
    return %c0_i32, %c0_i32_0 : i32, i32
  }
  func.func @transform_8(%arg0: i32) -> (i32, i32) {
    %c0_i32 = arith.constant 0 : i32
    %c0_i32_0 = arith.constant 0 : i32
    %c0_i32_1 = arith.constant 0 : i32
    return %c0_i32, %c0_i32_0 : i32, i32
  }
  func.func @transform_9(%arg0: i32) -> (i32, i32, i32) {
    %c0_i32 = arith.constant 0 : i32
    %c0_i32_0 = arith.constant 0 : i32
    %c0_i32_1 = arith.constant 0 : i32
    return %arg0, %c0_i32, %c0_i32_0 : i32, i32, i32
  }
}

module attributes {stable_mosaic.version = 11 : i64} {
  func.func @_attn_kernel(%arg0: i32, %arg1: memref<2x8x32xf32, #tpu.memory_space<vmem>>, %arg2: memref<32x32xf32, #tpu.memory_space<vmem>>, %arg3: memref<1x32xf32, #tpu.memory_space<vmem>>, %arg4: memref<32x32xf32, #tpu.memory_space<vmem>>, %arg5: memref<1x32xf32, #tpu.memory_space<vmem>>, %arg6: memref<32x32xf32, #tpu.memory_space<vmem>>, %arg7: memref<1x32xf32, #tpu.memory_space<vmem>>, %arg8: memref<32x32xf32, #tpu.memory_space<vmem>>, %arg9: memref<1x32xf32, #tpu.memory_space<vmem>>, %arg10: memref<2x8x32xf32, #tpu.memory_space<vmem>>, %arg11: memref<2x8x32xf32, #tpu.memory_space<vmem>>) attributes {dimension_semantics = [#tpu.dimension_semantics<parallel>], iteration_bounds = array<i64: 1>, scalar_prefetch = 0 : i64, scratch_operands = 1 : i64, tpu.core_type = #tpu.core_type<tc>, window_params = [{transform_indices = @transform_0, window_bounds = array<i64: 2, 8, 32>}, {pipeline_mode = #tpu.pipeline_mode<synchronous>, transform_indices = @transform_1, window_bounds = array<i64: 32, 32>}, {pipeline_mode = #tpu.pipeline_mode<synchronous>, transform_indices = @transform_2, window_bounds = array<i64: 1, 32>}, {pipeline_mode = #tpu.pipeline_mode<synchronous>, transform_indices = @transform_3, window_bounds = array<i64: 32, 32>}, {pipeline_mode = #tpu.pipeline_mode<synchronous>, transform_indices = @transform_4, window_bounds = array<i64: 1, 32>}, {pipeline_mode = #tpu.pipeline_mode<synchronous>, transform_indices = @transform_5, window_bounds = array<i64: 32, 32>}, {pipeline_mode = #tpu.pipeline_mode<synchronous>, transform_indices = @transform_6, window_bounds = array<i64: 1, 32>}, {pipeline_mode = #tpu.pipeline_mode<synchronous>, transform_indices = @transform_7, window_bounds = array<i64: 32, 32>}, {pipeline_mode = #tpu.pipeline_mode<synchronous>, transform_indices = @transform_8, window_bounds = array<i64: 1, 32>}, {transform_indices = @transform_9, window_bounds = array<i64: 2, 8, 32>}]} {
    %c0 = arith.constant 0 : index
    %c0_0 = arith.constant 0 : index
    %c0_1 = arith.constant 0 : index
    %0 = vector.load %arg1[%c0, %c0_0, %c0_1] : memref<2x8x32xf32, #tpu.memory_space<vmem>>, vector<2x8x32xf32>
    %1 = vector.shape_cast %0 : vector<2x8x32xf32> to vector<16x32xf32>
    %c0_2 = arith.constant 0 : index
    %c0_3 = arith.constant 0 : index
    %2 = vector.load %arg2[%c0_2, %c0_3] : memref<32x32xf32, #tpu.memory_space<vmem>>, vector<32x32xf32>
    %cst = arith.constant dense<0.000000e+00> : vector<16x32xf32>
    %3 = tpu.matmul %1, %2, %cst {dimension_numbers = #tpu.dot_dimension_numbers<[1], [0], [0], [1], [0, 0, 1, 1], [], []>} : vector<16x32xf32>, vector<32x32xf32>, vector<16x32xf32> -> vector<16x32xf32>
    %c0_4 = arith.constant 0 : index
    %c0_5 = arith.constant 0 : index
    %4 = vector.load %arg3[%c0_4, %c0_5] : memref<1x32xf32, #tpu.memory_space<vmem>>, vector<1x32xf32>
    %5 = vector.broadcast %4 : vector<1x32xf32> to vector<16x32xf32>
    %6 = arith.addf %3, %5 : vector<16x32xf32>
    %c0_6 = arith.constant 0 : index
    %c0_7 = arith.constant 0 : index
    %7 = vector.load %arg4[%c0_6, %c0_7] : memref<32x32xf32, #tpu.memory_space<vmem>>, vector<32x32xf32>
    %cst_8 = arith.constant dense<0.000000e+00> : vector<16x32xf32>
    %8 = tpu.matmul %1, %7, %cst_8 {dimension_numbers = #tpu.dot_dimension_numbers<[1], [0], [0], [1], [0, 0, 1, 1], [], []>} : vector<16x32xf32>, vector<32x32xf32>, vector<16x32xf32> -> vector<16x32xf32>
    %c0_9 = arith.constant 0 : index
    %c0_10 = arith.constant 0 : index
    %9 = vector.load %arg5[%c0_9, %c0_10] : memref<1x32xf32, #tpu.memory_space<vmem>>, vector<1x32xf32>
    %10 = vector.broadcast %9 : vector<1x32xf32> to vector<16x32xf32>
    %11 = arith.addf %8, %10 : vector<16x32xf32>
    %c0_11 = arith.constant 0 : index
    %c0_12 = arith.constant 0 : index
    %12 = vector.load %arg6[%c0_11, %c0_12] : memref<32x32xf32, #tpu.memory_space<vmem>>, vector<32x32xf32>
    %cst_13 = arith.constant dense<0.000000e+00> : vector<16x32xf32>
    %13 = tpu.matmul %1, %12, %cst_13 {dimension_numbers = #tpu.dot_dimension_numbers<[1], [0], [0], [1], [0, 0, 1, 1], [], []>} : vector<16x32xf32>, vector<32x32xf32>, vector<16x32xf32> -> vector<16x32xf32>
    %c0_14 = arith.constant 0 : index
    %c0_15 = arith.constant 0 : index
    %14 = vector.load %arg7[%c0_14, %c0_15] : memref<1x32xf32, #tpu.memory_space<vmem>>, vector<1x32xf32>
    %15 = vector.broadcast %14 : vector<1x32xf32> to vector<16x32xf32>
    %16 = arith.addf %13, %15 : vector<16x32xf32>
    %cst_16 = arith.constant 0.353553385 : f32
    %17 = vector.broadcast %cst_16 : f32 to vector<16x32xf32>
    %18 = arith.mulf %6, %17 : vector<16x32xf32>
    %19 = vector.shape_cast %18 : vector<16x32xf32> to vector<2x8x32xf32>
    %20 = vector.shape_cast %11 : vector<16x32xf32> to vector<2x8x32xf32>
    %21 = vector.shape_cast %16 : vector<16x32xf32> to vector<2x8x32xf32>
    %22 = vector.extract_strided_slice %19 {offsets = [0, 0, 0], sizes = [2, 8, 8], strides = [1, 1, 1]} : vector<2x8x32xf32> to vector<2x8x8xf32>
    %23 = vector.extract_strided_slice %20 {offsets = [0, 0, 0], sizes = [2, 8, 8], strides = [1, 1, 1]} : vector<2x8x32xf32> to vector<2x8x8xf32>
    %24 = vector.extract_strided_slice %21 {offsets = [0, 0, 0], sizes = [2, 8, 8], strides = [1, 1, 1]} : vector<2x8x32xf32> to vector<2x8x8xf32>
    "tpu.trace_start"() <{level = 10 : i32, message = "bqd,bkd->bqk"}> : () -> ()
    %cst_17 = arith.constant dense<0.000000e+00> : vector<2x8x8xf32>
    %25 = tpu.matmul %22, %23, %cst_17 {dimension_numbers = #tpu.dot_dimension_numbers<[2], [2], [1], [1], [0, 0, 0, 1, 1, 1], [0], [0]>} : vector<2x8x8xf32>, vector<2x8x8xf32>, vector<2x8x8xf32> -> vector<2x8x8xf32>
    "tpu.trace_stop"() : () -> ()
    %cst_18 = arith.constant dense<0xFF800000> : vector<2x8xf32>
    %26 = vector.multi_reduction <maximumf>, %25, %cst_18 [2] : vector<2x8x8xf32> to vector<2x8xf32>
    %27 = vector.shape_cast %26 : vector<2x8xf32> to vector<2x8x1xf32>
    %28 = vector.broadcast %27 : vector<2x8x1xf32> to vector<2x8x8xf32>
    %29 = arith.subf %25, %28 : vector<2x8x8xf32>
    %30 = math.exp %29 : vector<2x8x8xf32>
    %cst_19 = arith.constant dense<0.000000e+00> : vector<2x8xf32>
    %31 = vector.multi_reduction <add>, %30, %cst_19 [2] : vector<2x8x8xf32> to vector<2x8xf32>
    %32 = vector.shape_cast %31 : vector<2x8xf32> to vector<2x8x1xf32>
    "tpu.trace_start"() <{level = 10 : i32, message = "bqk,bkd->bqd"}> : () -> ()
    %cst_20 = arith.constant dense<0.000000e+00> : vector<2x8x8xf32>
    %33 = tpu.matmul %30, %24, %cst_20 {dimension_numbers = #tpu.dot_dimension_numbers<[2], [1], [1], [2], [0, 0, 0, 1, 1, 2], [0], [0]>} : vector<2x8x8xf32>, vector<2x8x8xf32>, vector<2x8x8xf32> -> vector<2x8x8xf32>
    "tpu.trace_stop"() : () -> ()
    %34 = tpu.reciprocal %32 : vector<2x8x1xf32> -> vector<2x8x1xf32>
    %35 = vector.broadcast %34 : vector<2x8x1xf32> to vector<2x8x8xf32>
    %36 = arith.mulf %33, %35 : vector<2x8x8xf32>
    %c0_21 = arith.constant 0 : index
    %c0_22 = arith.constant 0 : index
    %c0_23 = arith.constant 0 : index
    %37 = vector.load %arg11[%c0_21, %c0_22, %c0_23] : memref<2x8x32xf32, #tpu.memory_space<vmem>>, vector<2x8x8xf32>
    tpu.vector_store %arg11[%c0_21, %c0_22, %c0_23], %36 {strides = array<i32>} : memref<2x8x32xf32, #tpu.memory_space<vmem>>, vector<2x8x8xf32>,
    %38 = vector.extract_strided_slice %19 {offsets = [0, 0, 8], sizes = [2, 8, 8], strides = [1, 1, 1]} : vector<2x8x32xf32> to vector<2x8x8xf32>
    %39 = vector.extract_strided_slice %20 {offsets = [0, 0, 8], sizes = [2, 8, 8], strides = [1, 1, 1]} : vector<2x8x32xf32> to vector<2x8x8xf32>
    %40 = vector.extract_strided_slice %21 {offsets = [0, 0, 8], sizes = [2, 8, 8], strides = [1, 1, 1]} : vector<2x8x32xf32> to vector<2x8x8xf32>
    "tpu.trace_start"() <{level = 10 : i32, message = "bqd,bkd->bqk"}> : () -> ()
    %cst_24 = arith.constant dense<0.000000e+00> : vector<2x8x8xf32>
    %41 = tpu.matmul %38, %39, %cst_24 {dimension_numbers = #tpu.dot_dimension_numbers<[2], [2], [1], [1], [0, 0, 0, 1, 1, 1], [0], [0]>} : vector<2x8x8xf32>, vector<2x8x8xf32>, vector<2x8x8xf32> -> vector<2x8x8xf32>
    "tpu.trace_stop"() : () -> ()
    %cst_25 = arith.constant dense<0xFF800000> : vector<2x8xf32>
    %42 = vector.multi_reduction <maximumf>, %41, %cst_25 [2] : vector<2x8x8xf32> to vector<2x8xf32>
    %43 = vector.shape_cast %42 : vector<2x8xf32> to vector<2x8x1xf32>
    %44 = vector.broadcast %43 : vector<2x8x1xf32> to vector<2x8x8xf32>
    %45 = arith.subf %41, %44 : vector<2x8x8xf32>
    %46 = math.exp %45 : vector<2x8x8xf32>
    %cst_26 = arith.constant dense<0.000000e+00> : vector<2x8xf32>
    %47 = vector.multi_reduction <add>, %46, %cst_26 [2] : vector<2x8x8xf32> to vector<2x8xf32>
    %48 = vector.shape_cast %47 : vector<2x8xf32> to vector<2x8x1xf32>
    "tpu.trace_start"() <{level = 10 : i32, message = "bqk,bkd->bqd"}> : () -> ()
    %cst_27 = arith.constant dense<0.000000e+00> : vector<2x8x8xf32>
    %49 = tpu.matmul %46, %40, %cst_27 {dimension_numbers = #tpu.dot_dimension_numbers<[2], [1], [1], [2], [0, 0, 0, 1, 1, 2], [0], [0]>} : vector<2x8x8xf32>, vector<2x8x8xf32>, vector<2x8x8xf32> -> vector<2x8x8xf32>
    "tpu.trace_stop"() : () -> ()
    %50 = tpu.reciprocal %48 : vector<2x8x1xf32> -> vector<2x8x1xf32>
    %51 = vector.broadcast %50 : vector<2x8x1xf32> to vector<2x8x8xf32>
    %52 = arith.mulf %49, %51 : vector<2x8x8xf32>
    %c0_28 = arith.constant 0 : index
    %c0_29 = arith.constant 0 : index
    %c8 = arith.constant 8 : index
    %53 = vector.load %arg11[%c0_28, %c0_29, %c8] : memref<2x8x32xf32, #tpu.memory_space<vmem>>, vector<2x8x8xf32>
    tpu.vector_store %arg11[%c0_28, %c0_29, %c8], %52 {strides = array<i32>} : memref<2x8x32xf32, #tpu.memory_space<vmem>>, vector<2x8x8xf32>,
    %54 = vector.extract_strided_slice %19 {offsets = [0, 0, 16], sizes = [2, 8, 8], strides = [1, 1, 1]} : vector<2x8x32xf32> to vector<2x8x8xf32>
    %55 = vector.extract_strided_slice %20 {offsets = [0, 0, 16], sizes = [2, 8, 8], strides = [1, 1, 1]} : vector<2x8x32xf32> to vector<2x8x8xf32>
    %56 = vector.extract_strided_slice %21 {offsets = [0, 0, 16], sizes = [2, 8, 8], strides = [1, 1, 1]} : vector<2x8x32xf32> to vector<2x8x8xf32>
    "tpu.trace_start"() <{level = 10 : i32, message = "bqd,bkd->bqk"}> : () -> ()
    %cst_30 = arith.constant dense<0.000000e+00> : vector<2x8x8xf32>
    %57 = tpu.matmul %54, %55, %cst_30 {dimension_numbers = #tpu.dot_dimension_numbers<[2], [2], [1], [1], [0, 0, 0, 1, 1, 1], [0], [0]>} : vector<2x8x8xf32>, vector<2x8x8xf32>, vector<2x8x8xf32> -> vector<2x8x8xf32>
    "tpu.trace_stop"() : () -> ()
    %cst_31 = arith.constant dense<0xFF800000> : vector<2x8xf32>
    %58 = vector.multi_reduction <maximumf>, %57, %cst_31 [2] : vector<2x8x8xf32> to vector<2x8xf32>
    %59 = vector.shape_cast %58 : vector<2x8xf32> to vector<2x8x1xf32>
    %60 = vector.broadcast %59 : vector<2x8x1xf32> to vector<2x8x8xf32>
    %61 = arith.subf %57, %60 : vector<2x8x8xf32>
    %62 = math.exp %61 : vector<2x8x8xf32>
    %cst_32 = arith.constant dense<0.000000e+00> : vector<2x8xf32>
    %63 = vector.multi_reduction <add>, %62, %cst_32 [2] : vector<2x8x8xf32> to vector<2x8xf32>
    %64 = vector.shape_cast %63 : vector<2x8xf32> to vector<2x8x1xf32>
    "tpu.trace_start"() <{level = 10 : i32, message = "bqk,bkd->bqd"}> : () -> ()
    %cst_33 = arith.constant dense<0.000000e+00> : vector<2x8x8xf32>
    %65 = tpu.matmul %62, %56, %cst_33 {dimension_numbers = #tpu.dot_dimension_numbers<[2], [1], [1], [2], [0, 0, 0, 1, 1, 2], [0], [0]>} : vector<2x8x8xf32>, vector<2x8x8xf32>, vector<2x8x8xf32> -> vector<2x8x8xf32>
    "tpu.trace_stop"() : () -> ()
    %66 = tpu.reciprocal %64 : vector<2x8x1xf32> -> vector<2x8x1xf32>
    %67 = vector.broadcast %66 : vector<2x8x1xf32> to vector<2x8x8xf32>
    %68 = arith.mulf %65, %67 : vector<2x8x8xf32>
    %c0_34 = arith.constant 0 : index
    %c0_35 = arith.constant 0 : index
    %c16 = arith.constant 16 : index
    %69 = vector.load %arg11[%c0_34, %c0_35, %c16] : memref<2x8x32xf32, #tpu.memory_space<vmem>>, vector<2x8x8xf32>
    tpu.vector_store %arg11[%c0_34, %c0_35, %c16], %68 {strides = array<i32>} : memref<2x8x32xf32, #tpu.memory_space<vmem>>, vector<2x8x8xf32>,
    %70 = vector.extract_strided_slice %19 {offsets = [0, 0, 24], sizes = [2, 8, 8], strides = [1, 1, 1]} : vector<2x8x32xf32> to vector<2x8x8xf32>
    %71 = vector.extract_strided_slice %20 {offsets = [0, 0, 24], sizes = [2, 8, 8], strides = [1, 1, 1]} : vector<2x8x32xf32> to vector<2x8x8xf32>
    %72 = vector.extract_strided_slice %21 {offsets = [0, 0, 24], sizes = [2, 8, 8], strides = [1, 1, 1]} : vector<2x8x32xf32> to vector<2x8x8xf32>
    "tpu.trace_start"() <{level = 10 : i32, message = "bqd,bkd->bqk"}> : () -> ()
    %cst_36 = arith.constant dense<0.000000e+00> : vector<2x8x8xf32>
    %73 = tpu.matmul %70, %71, %cst_36 {dimension_numbers = #tpu.dot_dimension_numbers<[2], [2], [1], [1], [0, 0, 0, 1, 1, 1], [0], [0]>} : vector<2x8x8xf32>, vector<2x8x8xf32>, vector<2x8x8xf32> -> vector<2x8x8xf32>
    "tpu.trace_stop"() : () -> ()
    %cst_37 = arith.constant dense<0xFF800000> : vector<2x8xf32>
    %74 = vector.multi_reduction <maximumf>, %73, %cst_37 [2] : vector<2x8x8xf32> to vector<2x8xf32>
    %75 = vector.shape_cast %74 : vector<2x8xf32> to vector<2x8x1xf32>
    %76 = vector.broadcast %75 : vector<2x8x1xf32> to vector<2x8x8xf32>
    %77 = arith.subf %73, %76 : vector<2x8x8xf32>
    %78 = math.exp %77 : vector<2x8x8xf32>
    %cst_38 = arith.constant dense<0.000000e+00> : vector<2x8xf32>
    %79 = vector.multi_reduction <add>, %78, %cst_38 [2] : vector<2x8x8xf32> to vector<2x8xf32>
    %80 = vector.shape_cast %79 : vector<2x8xf32> to vector<2x8x1xf32>
    "tpu.trace_start"() <{level = 10 : i32, message = "bqk,bkd->bqd"}> : () -> ()
    %cst_39 = arith.constant dense<0.000000e+00> : vector<2x8x8xf32>
    %81 = tpu.matmul %78, %72, %cst_39 {dimension_numbers = #tpu.dot_dimension_numbers<[2], [1], [1], [2], [0, 0, 0, 1, 1, 2], [0], [0]>} : vector<2x8x8xf32>, vector<2x8x8xf32>, vector<2x8x8xf32> -> vector<2x8x8xf32>
    "tpu.trace_stop"() : () -> ()
    %82 = tpu.reciprocal %80 : vector<2x8x1xf32> -> vector<2x8x1xf32>
    %83 = vector.broadcast %82 : vector<2x8x1xf32> to vector<2x8x8xf32>
    %84 = arith.mulf %81, %83 : vector<2x8x8xf32>
    %c0_40 = arith.constant 0 : index
    %c0_41 = arith.constant 0 : index
    %c24 = arith.constant 24 : index
    %85 = vector.load %arg11[%c0_40, %c0_41, %c24] : memref<2x8x32xf32, #tpu.memory_space<vmem>>, vector<2x8x8xf32>
    tpu.vector_store %arg11[%c0_40, %c0_41, %c24], %84 {strides = array<i32>} : memref<2x8x32xf32, #tpu.memory_space<vmem>>, vector<2x8x8xf32>,
    %c0_42 = arith.constant 0 : index
    %c0_43 = arith.constant 0 : index
    %c0_44 = arith.constant 0 : index
    %86 = vector.load %arg11[%c0_42, %c0_43, %c0_44] : memref<2x8x32xf32, #tpu.memory_space<vmem>>, vector<2x8x32xf32>
    %87 = vector.shape_cast %86 : vector<2x8x32xf32> to vector<16x32xf32>
    %c0_45 = arith.constant 0 : index
    %c0_46 = arith.constant 0 : index
    %88 = vector.load %arg8[%c0_45, %c0_46] : memref<32x32xf32, #tpu.memory_space<vmem>>, vector<32x32xf32>
    %cst_47 = arith.constant dense<0.000000e+00> : vector<16x32xf32>
    %89 = tpu.matmul %87, %88, %cst_47 {dimension_numbers = #tpu.dot_dimension_numbers<[1], [0], [0], [1], [0, 0, 1, 1], [], []>} : vector<16x32xf32>, vector<32x32xf32>, vector<16x32xf32> -> vector<16x32xf32>
    %c0_48 = arith.constant 0 : index
    %c0_49 = arith.constant 0 : index
    %90 = vector.load %arg9[%c0_48, %c0_49] : memref<1x32xf32, #tpu.memory_space<vmem>>, vector<1x32xf32>
    %91 = vector.broadcast %90 : vector<1x32xf32> to vector<16x32xf32>
    %92 = arith.addf %89, %91 : vector<16x32xf32>
    %93 = vector.shape_cast %92 : vector<16x32xf32> to vector<2x8x32xf32>
    %c0_50 = arith.constant 0 : index
    %c0_51 = arith.constant 0 : index
    %c0_52 = arith.constant 0 : index
    %94 = vector.load %arg10[%c0_50, %c0_51, %c0_52] : memref<2x8x32xf32, #tpu.memory_space<vmem>>, vector<2x8x32xf32>
    tpu.vector_store %arg10[%c0_50, %c0_51, %c0_52], %93 {strides = array<i32>} : memref<2x8x32xf32, #tpu.memory_space<vmem>>, vector<2x8x32xf32>,
    return
  }
  func.func @transform_0(%arg0: i32) -> (i32, i32, i32) {
    %c0_i32 = arith.constant 0 : i32
    %c0_i32_0 = arith.constant 0 : i32
    %c0_i32_1 = arith.constant 0 : i32
    return %arg0, %c0_i32, %c0_i32_0 : i32, i32, i32
  }
  func.func @transform_1(%arg0: i32) -> (i32, i32) {
    %c0_i32 = arith.constant 0 : i32
    %c0_i32_0 = arith.constant 0 : i32
    %c0_i32_1 = arith.constant 0 : i32
    return %c0_i32, %c0_i32_0 : i32, i32
  }
  func.func @transform_2(%arg0: i32) -> (i32, i32) {
    %c0_i32 = arith.constant 0 : i32
    %c0_i32_0 = arith.constant 0 : i32
    %c0_i32_1 = arith.constant 0 : i32
    return %c0_i32, %c0_i32_0 : i32, i32
  }
  func.func @transform_3(%arg0: i32) -> (i32, i32) {
    %c0_i32 = arith.constant 0 : i32
    %c0_i32_0 = arith.constant 0 : i32
    %c0_i32_1 = arith.constant 0 : i32
    return %c0_i32, %c0_i32_0 : i32, i32
  }
  func.func @transform_4(%arg0: i32) -> (i32, i32) {
    %c0_i32 = arith.constant 0 : i32
    %c0_i32_0 = arith.constant 0 : i32
    %c0_i32_1 = arith.constant 0 : i32
    return %c0_i32, %c0_i32_0 : i32, i32
  }
  func.func @transform_5(%arg0: i32) -> (i32, i32) {
    %c0_i32 = arith.constant 0 : i32
    %c0_i32_0 = arith.constant 0 : i32
    %c0_i32_1 = arith.constant 0 : i32
    return %c0_i32, %c0_i32_0 : i32, i32
  }
  func.func @transform_6(%arg0: i32) -> (i32, i32) {
    %c0_i32 = arith.constant 0 : i32
    %c0_i32_0 = arith.constant 0 : i32
    %c0_i32_1 = arith.constant 0 : i32
    return %c0_i32, %c0_i32_0 : i32, i32
  }
  func.func @transform_7(%arg0: i32) -> (i32, i32) {
    %c0_i32 = arith.constant 0 : i32
    %c0_i32_0 = arith.constant 0 : i32
    %c0_i32_1 = arith.constant 0 : i32
    return %c0_i32, %c0_i32_0 : i32, i32
  }
  func.func @transform_8(%arg0: i32) -> (i32, i32) {
    %c0_i32 = arith.constant 0 : i32
    %c0_i32_0 = arith.constant 0 : i32
    %c0_i32_1 = arith.constant 0 : i32
    return %c0_i32, %c0_i32_0 : i32, i32
  }
  func.func @transform_9(%arg0: i32) -> (i32, i32, i32) {
    %c0_i32 = arith.constant 0 : i32
    %c0_i32_0 = arith.constant 0 : i32
    %c0_i32_1 = arith.constant 0 : i32
    return %arg0, %c0_i32, %c0_i32_0 : i32, i32, i32
  }
}

</mosaic_0001>

<bundles_post_ra>
// kernel: tpu_custom_call.1
= control target key start
LH: loop header
LB: loop body
LE: loop exit
PB: predicated region body
PF: predicated region fallthrough
CT: control target
= control target key end

     0   :  { %14 = vsyncpa [#allocation4], 0  ;;  %s2630_s0 = inlined_call_operand.hbm [shape: f32[2,8,32], index: 0, kind: input, shape index: {}]   ;;  %s2631_s1 = inlined_call_operand.hbm [shape: f32[32,32], index: 1, kind: input, shape index: {}]   ;;  %s2632_s2 = inlined_call_operand.vmem [shape: f32[1,32], index: 2, kind: input, shape index: {}]   ;;  %s2633_s3 = inlined_call_operand.hbm [shape: f32[32,32], index: 3, kind: input, shape index: {}]   ;;  %s2634_s4 = inlined_call_operand.vmem [shape: f32[1,32], index: 4, kind: input, shape index: {}]   ;;  %s2635_s5 = inlined_call_operand.hbm [shape: f32[32,32], index: 5, kind: input, shape index: {}]   ;;  %s2636_s6 = inlined_call_operand.vmem [shape: f32[1,32], index: 6, kind: input, shape index: {}]   ;;  %s2637_s7 = inlined_call_operand.hbm [shape: f32[32,32], index: 7, kind: input, shape index: {}]   ;;  %s2638_s8 = inlined_call_operand.vmem [shape: f32[1,32], index: 8, kind: input, shape index: {}]   ;;  %s2639_s9 = inlined_call_operand.hbm [shape: f32[2,8,32], index: 9, kind: output, shape index: {}]  }
   0x1   :  { %15 = vsyncpa [#allocation7], 0 }
   0x2   :  { %16 = vsyncpa [#allocation10], 0 }
   0x3   :  { %17 = vsyncpa [#allocation5], 0  ;;  %s2268_s30 = smov [#allocation6]   ;;  %s2269_s11 = smov [#allocation9]  }
   0x4   :  { %s35_s10 = sshll.u32 %s2268_s30, 4  ;;  %s63_s12 = sshll.u32 %s2269_s11, 4  ;;  %s36_s10 = int_to_ptr.vmem [resolvable:$true] %s35_s10  ;;  %s2333_s12 = int_to_ptr.vmem [resolvable:$true] %s63_s12 }
   0x5   :  { %s2128_s15 = scalar_lea.hbm %s2631_s1, 512 }
   0x6   :  { %p2129_p0 = scmp.ne.s32.totalorder %s2631_s1, %s2128_s15  ;;  %p2132_p1 = scmp.lt.u32.totalorder %s2128_s15, %s2631_s1 }
   0x8   :  { %p2134_p2 = pnand %p2132_p1, %p2129_p0 }
   0xa   :  { %2137 = shalt.err (!%p2134_p2)
}
   0xb   :  { %s2138_s20 = scalar_lea.vmem %s36_s10, 512  ;;  %p2143_p4 = scmp.lt.s32.totalorder %s36_s10, %s36_s10 }
   0xc   :  { %p2139_p3 = scmp.ne.s32.totalorder %s36_s10, %s2138_s20  ;;  %p2144_p5 = scmp.lt.s32.totalorder %s2138_s20, %s2138_s20 }
   0xe   :  { %p2145_p6 = por %p2144_p5, %p2143_p4 }
  0x10   :  { %p2146_p7 = pnand %p2145_p6, %p2139_p3 }
  0x12   :  { %2149 = shalt.err (!%p2146_p7)
}
  0x13   :  { %s2270_s21 = smov 128   ;;  %s2271_s22 = smov 8  }
  0x14   :  { %41 = dma.hbm_to_vmem [thread:$0]  %s2631_s1, 512, %s36_s10, [#allocation7], %s2270_s21, %s2270_s21, %s2271_s22  }
  0x15   :  { %s2150_s27 = scalar_lea.hbm %s2635_s5, 512 }
  0x16   :  { %p2151_p8 = scmp.ne.s32.totalorder %s2635_s5, %s2150_s27  ;;  %p2154_p9 = scmp.lt.u32.totalorder %s2150_s27, %s2635_s5 }
  0x18   :  { %p2156_p10 = pnand %p2154_p9, %p2151_p8 }
  0x1a   :  { %2159 = shalt.err (!%p2156_p10)
}
  0x1b   :  { %s2160_s13 = scalar_lea.vmem %s2333_s12, 512  ;;  %p2165_p12 = scmp.lt.s32.totalorder %s2333_s12, %s2333_s12 }
  0x1c   :  { %p2161_p11 = scmp.ne.s32.totalorder %s2333_s12, %s2160_s13  ;;  %p2166_p13 = scmp.lt.s32.totalorder %s2160_s13, %s2160_s13 }
  0x1e   :  { %p2167_p0 = por %p2166_p13, %p2165_p12 }
  0x20   :  { %p2168_p1 = pnand %p2167_p0, %p2161_p11 }
  0x22   :  { %2171 = shalt.err (!%p2168_p1)
}
  0x23   :  { %69 = dma.hbm_to_vmem [thread:$0]  %s2635_s5, 512, %s2333_s12, [#allocation10], %s2270_s21, %s2270_s21, %s2271_s22  }
  0x24   :  { %s2272_s14 = smov [#allocation3]   ;;  %s2273_s16 = smov [#allocation8]  }
  0x25   :  { %s23_s15 = sshll.u32 %s2272_s14, 4  ;;  %s49_s17 = sshll.u32 %s2273_s16, 4  ;;  %s24_s15 = int_to_ptr.vmem [resolvable:$true] %s23_s15  ;;  %s2370_s17 = int_to_ptr.vmem [resolvable:$true] %s49_s17 }
  0x26   :  { %s2172_s20 = scalar_lea.hbm %s2630_s0, 256 }
  0x27   :  { %p2173_p2 = scmp.ne.s32.totalorder %s2630_s0, %s2172_s20  ;;  %p2176_p3 = scmp.lt.u32.totalorder %s2172_s20, %s2630_s0 }
  0x29   :  { %p2178_p4 = pnand %p2176_p3, %p2173_p2 }
  0x2b   :  { %2181 = shalt.err (!%p2178_p4)
}
  0x2c   :  { %s2182_s5 = scalar_lea.vmem %s24_s15, 256  ;;  %p2187_p6 = scmp.lt.s32.totalorder %s24_s15, %s24_s15 }
  0x2d   :  { %p2183_p5 = scmp.ne.s32.totalorder %s24_s15, %s2182_s5  ;;  %p2188_p7 = scmp.lt.s32.totalorder %s2182_s5, %s2182_s5 }
  0x2f   :  { %p2189_p8 = por %p2188_p7, %p2187_p6 }
  0x31   :  { %p2190_p9 = pnand %p2189_p8, %p2183_p5 }
  0x33   :  { %2193 = shalt.err (!%p2190_p9)
}
  0x34   :  { %29 = dma.hbm_to_vmem [thread:$0]  %s2630_s0, 256, %s24_s15, [#allocation4], %s2270_s21, %s2270_s21, %s2271_s22  }
  0x35   :  { %s2194_s30 = scalar_lea.hbm %s2633_s3, 512 }
  0x36   :  { %p2195_p10 = scmp.ne.s32.totalorder %s2633_s3, %s2194_s30  ;;  %p2198_p11 = scmp.lt.u32.totalorder %s2194_s30, %s2633_s3 }
  0x38   :  { %p2200_p12 = pnand %p2198_p11, %p2195_p10 }
  0x3a   :  { %2203 = shalt.err (!%p2200_p12)
}
  0x3b   :  { %s2204_s14 = scalar_lea.vmem %s2370_s17, 512  ;;  %p2209_p0 = scmp.lt.s32.totalorder %s2370_s17, %s2370_s17 }
  0x3c   :  { %p2205_p13 = scmp.ne.s32.totalorder %s2370_s17, %s2204_s14  ;;  %p2210_p1 = scmp.lt.s32.totalorder %s2204_s14, %s2204_s14 }
  0x3e   :  { %p2211_p2 = por %p2210_p1, %p2209_p0 }
  0x40   :  { %p2212_p3 = pnand %p2211_p2, %p2205_p13 }
  0x42   :  { %2215 = shalt.err (!%p2212_p3)
}
  0x43   :  { %55 = dma.hbm_to_vmem [thread:$0]  %s2633_s3, 512, %s2370_s17, [#allocation7], %s2270_s21, %s2270_s21, %s2271_s22  }
  0x44   :  { %s2274_s16 = smov [#allocation11]   ;;  %s2216_s23 = scalar_lea.hbm %s2637_s7, 512 }
  0x45   :  { %s77_s18 = sshll.u32 %s2274_s16, 4  ;;  %p2217_p4 = scmp.ne.s32.totalorder %s2637_s7, %s2216_s23  ;;  %s78_s18 = int_to_ptr.vmem [resolvable:$true] %s77_s18 }
  0x46   :  { %p2220_p5 = scmp.lt.u32.totalorder %s2216_s23, %s2637_s7 }
  0x48   :  { %p2222_p6 = pnand %p2220_p5, %p2217_p4 }
  0x4a   :  { %2225 = shalt.err (!%p2222_p6)
}
  0x4b   :  { %s2226_s12 = scalar_lea.vmem %s78_s18, 512  ;;  %p2231_p8 = scmp.lt.s32.totalorder %s78_s18, %s78_s18 }
  0x4c   :  { %p2227_p7 = scmp.ne.s32.totalorder %s78_s18, %s2226_s12  ;;  %p2232_p9 = scmp.lt.s32.totalorder %s2226_s12, %s2226_s12 }
  0x4e   :  { %p2233_p10 = por %p2232_p9, %p2231_p8 }
  0x50   :  { %p2234_p11 = pnand %p2233_p10, %p2227_p7 }
  0x52   :  { %2237 = shalt.err (!%p2234_p11)
}
  0x53   :  { %83 = dma.hbm_to_vmem [thread:$0]  %s2637_s7, 512, %s78_s18, [#allocation10], %s2270_s21, %s2270_s21, %s2271_s22  }
  0x54   :  { %2260 = dma.done.wait [#allocation4], 256  }
  0x55   :  { %2261 = vsyncadd [#allocation4], 4294967040 }
  0x56   :  { %2262 = dma.done.wait [#allocation7], 1024  }
  0x57   :  { %2263 = vsyncadd [#allocation7], 4294966272 }
  0x58   :  { %2264 = dma.done.wait [#allocation10], 1024  }
  0x59   :  { %2265 = vsyncadd [#allocation10], 4294966272  ;;  %v103_v0 = vld [vmem:[#allocation6] sm:$0xff]  ;;  %v104_v1 = vld [vmem:[#allocation6 + $0x8] sm:$0xff]  ;;  %vm114_vm0 = vcmask 261120   ;;  %v2275_v14 = vmov 0.0  }
  0x5a   :  { %v196_v2 = vld [vmem:[#allocation8] sm:$0xff]  ;;  %v2049_v3 = vpack.c.bf16 %v104_v1, %v103_v0  ;;  %v197_v4 = vld [vmem:[#allocation8 + $0x8] sm:$0xff]  ;;  %v105_v5 = vld [vmem:[#allocation6 + $0x10] sm:$0xff]  ;;  %vm2276_vm1 = vmmov 0   ;;  %vm370_vm2 = vcmask 64512   ;;  %s2277_s30 = smov 120  }
  0x5b   :  { %v106_v6 = vld [vmem:[#allocation6 + $0x18] sm:$0xff]  ;;  %v2057_v7 = vpack.c.bf16 %v197_v4, %v196_v2  ;;  %v198_v9 = vld [vmem:[#allocation8 + $0x10] sm:$0xff]  ;;  %v282_v15 = vld [vmem:[#allocation9] sm:$0xff]  ;;  %s2279_s11 = smov 104   ;;  %s2280_s13 = smov 16   ;;  %vm1033_vm3 = vcmask 130112  }
  0x5c   :  { %v2053_v8 = vpack.c.bf16 %v106_v6, %v105_v5  ;;  %v199_v10 = vld [vmem:[#allocation8 + $0x18] sm:$0xff]  ;;  %v101_v11 = vld [vmem:[#allocation3] sm:$0xff]  ;;  %2050 = vmatprep.subr.bf16.mxu0 %v2049_v3  ;;  %v283_v16 = vld [vmem:[#allocation9 + $0x8] sm:$0xff]  ;;  %vm1374_vm4 = vcmask 195712   ;;  %s2281_s1 = smov 24   ;;  %vm1715_vm5 = vcmask 261312  }
  0x5d   :  { %v2061_v12 = vpack.c.bf16 %v199_v10, %v198_v9  ;;  %1933 = vmatprep.mubr.msk.f32.mxu0 %vm114_vm0, %v101_v11  ;;  %2058 = vmatprep.subr.bf16.mxu1 %v2057_v7  ;;  %v102_v13 = vld [vmem:[#allocation3 + $0x8] sm:$0xff]  ;;  %v284_v17 = vld [vmem:[#allocation9 + $0x10] sm:$0xff]  ;;  %v2065_v18 = vpack.c.bf16 %v283_v16, %v282_v15  ;;  %v1833_v21 = vld [vmem:[%s2632_s2] ss:$0 sm:$0xff]  ;;  %s2282_s0 = smov [#allocation12]  }
  0x5e   :  { %2052 = vmatpush3.bf16.msra.mxu0 %v2049_v3  ;;  %2060 = vmatpush3.bf16.msra.mxu1 %v2057_v7  ;;  %v285_v19 = vld [vmem:[#allocation9 + $0x18] sm:$0xff]  ;;  %v1836_v23 = vld [vmem:[%s2634_s4] ss:$0 sm:$0xff]  ;;  %s1819_s15 = sshll.u32 %s2282_s0, 4  ;;  %s1820_s15 = int_to_ptr.vmem [resolvable:$true] %s1819_s15 }
  0x5f   :  { %2054 = vmatprep.subr.bf16.mxu0 %v2053_v8  ;;  %2062 = vmatprep.subr.bf16.mxu1 %v2061_v12  ;;  %v2069_v20 = vpack.c.bf16 %v285_v19, %v284_v17  ;;  %v1839_v41 = vld [vmem:[%s2636_s6] ss:$0 sm:$0xff]  ;;  %s2278_s6 = smov 112   ;;  %s2238_s16 = scalar_lea.vmem %s1820_s15, 256 }
  0x60   :  { %1944 = vmatprep.mubr.msk.f32.mxu1 %vm114_vm0, %v101_v11  ;;  %p2239_p12 = scmp.ne.s32.totalorder %s1820_s15, %s2238_s16  ;;  %p2243_p13 = scmp.lt.s32.totalorder %s1820_s15, %s1820_s15 }
  0x61   :  { %p2244_p0 = scmp.lt.s32.totalorder %s2238_s16, %s2238_s16 }
  0x62   :  { %2056 = vmatpush3.bf16.msra.mxu0 %v2053_v8  ;;  %2064 = vmatpush3.bf16.msra.mxu1 %v2061_v12 }
  0x63   :  { %1958 = vmatprep.subr.mxu1 %v2275_v14  ;;  %2066 = vmatprep.subr.bf16.mxu0 %v2065_v18  ;;  %p2245_p1 = por %p2244_p0, %p2243_p13 }
  0x65   :  { %1934 = vmatmul.mubr.msk.f32.vlgmr.msra.gmra.mrb[0].mxu0 %vm114_vm0, %v102_v13  ;;  %1945 = vmatmul.mubr.msk.f32.vlgmr.msra.gmra.mrb[0].mxu1 %vm114_vm0, %v102_v13  ;;  %p2246_p2 = pnand %p2245_p1, %p2239_p12 }
  0x66   :  { %1955 = vmatprep.mubr.msk.f32.mxu0 %vm114_vm0, %v101_v11  ;;  %1960 = vmatprep.mubr.msk.f32.mxu1 %vm2276_vm1, %v2275_v14 }
  0x67   :  { %2068 = vmatpush3.bf16.msra.mxu0 %v2065_v18 }
  0x68   :  { %2070 = vmatprep.subr.bf16.mxu0 %v2069_v20 }
  0x6b   :  { %2072 = vmatpush3.bf16.msra.mxu0 %v2069_v20 }
  0x6c   :  { %1978 = vmatprep.subr.mxu0 %v2275_v14 }
  0x6e   :  { %1956 = vmatmul.mubr.msk.f32.vlgmr.msra.gmra.mrb[2].mxu0 %vm114_vm0, %v102_v13 }
  0x6f   :  { %1980 = vmatprep.mubr.msk.f32.mxu0 %vm2276_vm1, %v2275_v14 }
 0x138   :  { %v1935_v22 = vpop.f32.mrb[0].mxu0  ;;  %v1946_v24 = vpop.f32.mrb[0].mxu1 }
 0x139   :  { %v187_v25 = vpop.f32.mrb[1].mxu0  ;;  %v273_v27 = vpop.f32.mrb[1].mxu1  ;;  %v193_v30 = vadd.f32 %v1935_v22, %v1833_v21  ;;  %v2449_v31 = vadd.f32 %v1946_v24, %v1836_v23 }
 0x13a   :  { %v188_v26 = vadd.f32 %v1833_v21, %v187_v25  ;;  %v2440_v28 = vadd.f32 %v1836_v23, %v273_v27 }
 0x13b   :  { %v2457_v32 = vmul.f32 0.35355338, %v193_v30 }
 0x13c   :  { %v2442_v29 = vmul.f32 0.35355338, %v188_v26  ;;  %695 = vrot.lane.b32.xlu1 %v2440_v28, %s2277_s30  ;;  %1959 = vmatpush3.xpose.msk.msra.mxu1 %vm370_vm2, %v2440_v28 }
 0x13d   :  { %1963 = vmatprep.subr.mxu1 %v2275_v14 }
 0x13f   :  { %1961 = vmatmul.mubr.msk.f32.vlgmr.msra.gmra.mrb[2].mxu1 %vm370_vm2, %v2442_v29 }
 0x140   :  { %773 = vrot.lane.b32.xlu1 %v2449_v31, %s2277_s30  ;;  %1964 = vmatpush3.xpose.msk.msra.mxu1 %vm370_vm2, %v2449_v31 }
 0x141   :  { %1965 = vmatprep.mubr.msk.f32.mxu1 %vm2276_vm1, %v2275_v14  ;;  %1968 = vmatprep.subr.mxu1 %v2275_v14  ;;  %v1957_v40 = vpop.f32.mrb[2].mxu0 }
 0x142   :  { %v2475_v42 = vadd.f32 %v1957_v40, %v1839_v41  ;;  %v359_v43 = vpop.f32.mrb[3].mxu0 }
 0x143   :  { %1966 = vmatmul.mubr.msk.f32.vlgmr.msra.gmra.mrb[4].mxu1 %vm370_vm2, %v2457_v32  ;;  %v2477_v44 = vadd.f32 %v1839_v41, %v359_v43 }
 0x144   :  { %771 = vrot.lane.b32.xlu1 %v2457_v32, %s2277_s30  ;;  %1970 = vmatprep.mubr.msk.f32.mxu1 %vm2276_vm1, %v2275_v14 }
 0x145   :  { %1969 = vmatpush3.msra.mxu1 %v2477_v44 }
 0x146   :  { %1973 = vmatprep.subr.mxu1 %v2275_v14 }
 0x148   :  { %868 = vrot.lane.b32.xlu1 %v2477_v44, %s2277_s30 }
 0x1ae   :  { %v696_v33 = vpop.permute.xlu1 %695 }
 0x1af   :  { %1979 = vmatpush3.xpose.msk.msra.mxu0 %vm370_vm2, %v696_v33 }
 0x1b0   :  { %1988 = vmatprep.subr.mxu0 %v2275_v14 }
 0x1b2   :  { %v774_v45 = vpop.permute.xlu1 %773 }
 0x1b6   :  { %v772_v48 = vpop.permute.xlu1 %771 }
 0x1ba   :  { %v869_v53 = vpop.permute.xlu1 %868 }
 0x212   :  { %v443_v34 = vpop.f32.mrb[2].mxu1 }
 0x213   :  { %v1962_v35 = vpop.f32.mrb[3].mxu1  ;;  %v523_v36 = vsel %vm370_vm2, %v443_v34, -inf }
 0x214   :  { %524 = vmax.xlane.f32.xlu0 %v523_v36 }
 0x216   :  { %v519_v37 = vpop.f32.mrb[4].mxu1 }
 0x217   :  { %v1967_v38 = vpop.f32.mrb[5].mxu1  ;;  %v526_v39 = vsel %vm370_vm2, %v519_v37, -inf }
 0x218   :  { %527 = vmax.xlane.f32.xlu0 %v526_v39 }
 0x22e   :  { %693 = vrot.lane.b32.xlu0 %v2442_v29, %s2277_s30 }
 0x2a1   :  { %v525_v46 = vpop.xlane.xlu0 %524 }
 0x2a2   :  { %v529_v47 = vsub.f32 %v443_v34, %v525_v46 }
 0x2a4   :  { %v531_v49 = vmul.f32 1.442695, %v529_v47 }
 0x2a5   :  { %v528_v50 = vpop.xlane.xlu0 %527 }
 0x2a6   :  { %2096 = vpow2.f32 %v531_v49  ;;  %v530_v51 = vsub.f32 %v519_v37, %v528_v50 }
 0x2a8   :  { %v533_v52 = vmul.f32 1.442695, %v530_v51 }
 0x2a9   :  { %v694_v54 = vpop.permute.xlu0 %693 }
 0x2aa   :  { %2098 = vpow2.f32 %v533_v52  ;;  %1981 = vmatmul.mubr.msk.f32.vlgmr.msra.gmra.mrb[4].mxu0 %vm370_vm2, %v694_v54 }
 0x2ab   :  { %1989 = vmatpush3.msra.mxu0 %v869_v53  ;;  %1990 = vmatprep.mubr.msk.f32.mxu0 %vm2276_vm1, %v2275_v14 }
 0x2ac   :  { %1998 = vmatprep.subr.mxu0 %v2275_v14 }
 0x2b0   :  { %v2489_v55 = vpop.eup %2096 }
 0x2b1   :  { %1971 = vmatmul.mubr.msk.f32.vlgmr.msra.gmra.mrb[6].mxu1 %vm370_vm2, %v2489_v55 }
 0x2b2   :  { %1974 = vmatpush3.msra.mxu1 %v2475_v42  ;;  %1975 = vmatprep.mubr.msk.f32.mxu1 %vm2276_vm1, %v2275_v14 }
 0x2b3   :  { %1983 = vmatprep.subr.mxu1 %v2275_v14 }
 0x2b4   :  { %v2497_v56 = vpop.eup %2098 }
 0x2b5   :  { %1976 = vmatmul.mubr.msk.f32.vlgmr.msra.gmra.mrb[8].mxu1 %vm370_vm2, %v2497_v56 }
 0x2b6   :  { %1985 = vmatprep.mubr.msk.f32.mxu1 %vm2276_vm1, %v2275_v14 }
 0x2b9   :  { %1984 = vmatpush3.xpose.msk.msra.mxu1 %vm370_vm2, %v774_v45 }
 0x2ba   :  { %1993 = vmatprep.subr.mxu1 %v2275_v14 }
 0x2bc   :  { %1986 = vmatmul.mubr.msk.f32.vlgmr.msra.gmra.mrb[10].mxu1 %vm370_vm2, %v772_v48 }
 0x2bd   :  { %1995 = vmatprep.mubr.msk.f32.mxu1 %vm2276_vm1, %v2275_v14 }
 0x37d   :  { %v767_v57 = vpop.f32.mrb[4].mxu0 }
 0x37e   :  { %v1982_v58 = vpop.f32.mrb[5].mxu0  ;;  %v849_v59 = vsel %vm370_vm2, %v767_v57, -inf }
 0x37f   :  { %850 = vmax.xlane.f32.xlu1 %v849_v59 }
 0x384   :  { %v2509_v60 = vpop.f32.mrb[6].mxu1 }
 0x385   :  { %v1972_v61 = vpop.f32.mrb[7].mxu1 }
 0x388   :  { %v2511_v62 = vpop.f32.mrb[8].mxu1 }
 0x389   :  { %v1977_v63 = vpop.f32.mrb[9].mxu1 }
 0x38f   :  { %v845_v0 = vpop.f32.mrb[10].mxu1 }
 0x390   :  { %v1987_v1 = vpop.f32.mrb[11].mxu1  ;;  %1038 = vrot.lane.b32.xlu1 %v2440_v28, %s2278_s6  ;;  %v852_v2 = vsel %vm370_vm2, %v845_v0, -inf }
 0x391   :  { %853 = vmax.xlane.f32.xlu0 %v852_v2  ;;  %v535_v2 = vsel %vm370_vm2, %v2489_v55, 0.0 }
 0x394   :  { %1116 = vrot.lane.b32.xlu1 %v2449_v31, %s2278_s6 }
 0x398   :  { %1036 = vrot.lane.b32.xlu1 %v2442_v29, %s2278_s6 }
 0x39c   :  { %1114 = vrot.lane.b32.xlu1 %v2457_v32, %s2278_s6 }
 0x3a0   :  { %1286 = vrot.lane.b32.xlu1 %v2475_v42, %s2278_s6 }
 0x3a4   :  { %1379 = vrot.lane.b32.xlu1 %v2440_v28, %s2279_s11 }
 0x3a7   :  { %945 = vrot.lane.b32.xlu0 %v2475_v42, %s2277_s30 }
 0x3ab   :  { %1210 = vrot.lane.b32.xlu0 %v2477_v44, %s2278_s6 }
 0x40c   :  { %v851_v3 = vpop.xlane.xlu1 %850 }
 0x40d   :  { %v855_v4 = vsub.f32 %v767_v57, %v851_v3 }
 0x40f   :  { %v857_v5 = vmul.f32 1.442695, %v855_v4 }
 0x410   :  { %v1039_v6 = vpop.permute.xlu1 %1038 }
 0x411   :  { %2100 = vpow2.f32 %v857_v5 }
 0x414   :  { %v1117_v7 = vpop.permute.xlu1 %1116 }
 0x418   :  { %v1037_v10 = vpop.permute.xlu1 %1036 }
 0x41b   :  { %v2524_v8 = vpop.eup %2100 }
 0x41c   :  { %1991 = vmatmul.mubr.msk.f32.vlgmr.msra.gmra.mrb[6].mxu0 %vm370_vm2, %v2524_v8  ;;  %v1115_v16 = vpop.permute.xlu1 %1114 }
 0x41d   :  { %1999 = vmatpush3.xpose.msk.msra.mxu0 %vm370_vm2, %v1039_v6  ;;  %2000 = vmatprep.mubr.msk.f32.mxu0 %vm2276_vm1, %v2275_v14 }
 0x41e   :  { %v854_v9 = vpop.xlane.xlu0 %853  ;;  %2008 = vmatprep.subr.mxu0 %v2275_v14 }
 0x41f   :  { %v856_v11 = vsub.f32 %v845_v0, %v854_v9 }
 0x420   :  { %2001 = vmatmul.mubr.msk.f32.vlgmr.msra.gmra.mrb[8].mxu0 %vm370_vm2, %v1037_v10  ;;  %v1287_v18 = vpop.permute.xlu1 %1286 }
 0x421   :  { %v859_v12 = vmul.f32 1.442695, %v856_v11  ;;  %2010 = vmatprep.mubr.msk.f32.mxu0 %vm2276_vm1, %v2275_v14 }
 0x422   :  { %v946_v13 = vpop.permute.xlu0 %945 }
 0x423   :  { %2102 = vpow2.f32 %v859_v12  ;;  %1994 = vmatpush3.msra.mxu1 %v946_v13 }
 0x424   :  { %2003 = vmatprep.subr.mxu1 %v2275_v14  ;;  %v1380_v30 = vpop.permute.xlu1 %1379 }
 0x426   :  { %v1211_v15 = vpop.permute.xlu0 %1210 }
 0x427   :  { %2009 = vmatpush3.msra.mxu0 %v1211_v15 }
 0x428   :  { %2018 = vmatprep.subr.mxu0 %v2275_v14 }
 0x42d   :  { %v2537_v17 = vpop.eup %2102 }
 0x42e   :  { %1996 = vmatmul.mubr.msk.f32.vlgmr.msra.gmra.mrb[12].mxu1 %vm370_vm2, %v2537_v17  ;;  %v864_v54 = vsel %vm370_vm2, %v2537_v17, 0.0 }
 0x42f   :  { %2004 = vmatpush3.xpose.msk.msra.mxu1 %vm370_vm2, %v1117_v7  ;;  %2005 = vmatprep.mubr.msk.f32.mxu1 %vm2276_vm1, %v2275_v14  ;;  %v538_v7 = vsel %vm370_vm2, %v2497_v56, 0.0 }
 0x430   :  { %2013 = vmatprep.subr.mxu1 %v2275_v14 }
 0x432   :  { %2006 = vmatmul.mubr.msk.f32.vlgmr.msra.gmra.mrb[14].mxu1 %vm370_vm2, %v1115_v16 }
 0x433   :  { %2014 = vmatpush3.msra.mxu1 %v1287_v18  ;;  %2015 = vmatprep.mubr.msk.f32.mxu1 %vm2276_vm1, %v2275_v14 }
 0x434   :  { %2023 = vmatprep.subr.mxu1 %v2275_v14 }
 0x4ef   :  { %v2549_v19 = vpop.f32.mrb[6].mxu0 }
 0x4f0   :  { %v1992_v20 = vpop.f32.mrb[7].mxu0 }
 0x4f3   :  { %v1110_v21 = vpop.f32.mrb[8].mxu0 }
 0x4f4   :  { %v2002_v22 = vpop.f32.mrb[9].mxu0  ;;  %v1192_v23 = vsel %vm370_vm2, %v1110_v21, -inf }
 0x4f5   :  { %1193 = vmax.xlane.f32.xlu1 %v1192_v23 }
 0x501   :  { %v2552_v24 = vpop.f32.mrb[12].mxu1 }
 0x502   :  { %v1997_v25 = vpop.f32.mrb[13].mxu1 }
 0x505   :  { %v1188_v26 = vpop.f32.mrb[14].mxu1 }
 0x506   :  { %v2007_v27 = vpop.f32.mrb[15].mxu1  ;;  %1377 = vrot.lane.b32.xlu1 %v2442_v29, %s2279_s11  ;;  %v1195_v28 = vsel %vm370_vm2, %v1188_v26, -inf }
 0x507   :  { %1196 = vmax.xlane.f32.xlu0 %v1195_v28 }
 0x51d   :  { %1457 = vrot.lane.b32.xlu0 %v2449_v31, %s2279_s11 }
 0x521   :  { %1455 = vrot.lane.b32.xlu0 %v2457_v32, %s2279_s11 }
 0x582   :  { %v1194_v33 = vpop.xlane.xlu1 %1193 }
 0x583   :  { %v1198_v34 = vsub.f32 %v1110_v21, %v1194_v33 }
 0x585   :  { %v1200_v35 = vmul.f32 1.442695, %v1198_v34  ;;  %v1721_v34 = vld [vmem:[#allocation11 + $0x8] sm:$0xff] }
 0x586   :  { %v1378_v31 = vpop.permute.xlu1 %1377 }
 0x587   :  { %2104 = vpow2.f32 %v1200_v35 }
 0x591   :  { %v2105_v36 = vpop.eup %2104 }
 0x592   :  { %2011 = vmatmul.mubr.msk.f32.vlgmr.msra.gmra.mrb[10].mxu0 %vm370_vm2, %v2105_v36  ;;  %v1204_v57 = vsel %vm370_vm2, %v2105_v36, 0.0 }
 0x593   :  { %2019 = vmatpush3.xpose.msk.msra.mxu0 %vm370_vm2, %v1380_v30  ;;  %2020 = vmatprep.mubr.msk.f32.mxu0 %vm2276_vm1, %v2275_v14 }
 0x594   :  { %v1197_v29 = vpop.xlane.xlu0 %1196  ;;  %2028 = vmatprep.subr.mxu0 %v2275_v14 }
 0x595   :  { %v1199_v37 = vsub.f32 %v1188_v26, %v1197_v29 }
 0x596   :  { %2021 = vmatmul.mubr.msk.f32.vlgmr.msra.gmra.mrb[12].mxu0 %vm370_vm2, %v1378_v31  ;;  %v1722_v31 = vld [vmem:[#allocation11 + $0x10] sm:$0xff] }
 0x597   :  { %v1202_v32 = vmul.f32 1.442695, %v1199_v37  ;;  %2030 = vmatprep.mubr.msk.f32.mxu0 %vm2276_vm1, %v2275_v14  ;;  %v1723_v37 = vld [vmem:[#allocation11 + $0x18] sm:$0xff] }
 0x598   :  { %v1458_v38 = vpop.permute.xlu0 %1457 }
 0x599   :  { %2106 = vpow2.f32 %v1202_v32 }
 0x59c   :  { %v1456_v40 = vpop.permute.xlu0 %1455 }
 0x5a3   :  { %v2107_v39 = vpop.eup %2106 }
 0x5a4   :  { %2016 = vmatmul.mubr.msk.f32.vlgmr.msra.gmra.mrb[16].mxu1 %vm370_vm2, %v2107_v39  ;;  %v1207_v53 = vsel %vm370_vm2, %v2107_v39, 0.0 }
 0x5a5   :  { %2024 = vmatpush3.xpose.msk.msra.mxu1 %vm370_vm2, %v1458_v38  ;;  %2025 = vmatprep.mubr.msk.f32.mxu1 %vm2276_vm1, %v2275_v14  ;;  %v2077_v38 = vpack.c.bf16 %v1723_v37, %v1722_v31 }
 0x5a6   :  { %2033 = vmatprep.subr.mxu1 %v2275_v14 }
 0x5a8   :  { %2026 = vmatmul.mubr.msk.f32.vlgmr.msra.gmra.mrb[18].mxu1 %vm370_vm2, %v1456_v40 }
 0x5a9   :  { %2035 = vmatprep.mubr.msk.f32.mxu1 %vm2276_vm1, %v2275_v14  ;;  %v861_v14 = vsel %vm370_vm2, %v2524_v8, 0.0 }
 0x665   :  { %v2577_v41 = vpop.f32.mrb[10].mxu0 }
 0x666   :  { %v2012_v43 = vpop.f32.mrb[11].mxu0 }
 0x669   :  { %v1451_v45 = vpop.f32.mrb[12].mxu0 }
 0x66a   :  { %v2022_v46 = vpop.f32.mrb[13].mxu0  ;;  %v1533_v47 = vsel %vm370_vm2, %v1451_v45, -inf }
 0x66b   :  { %1534 = vmax.xlane.f32.xlu1 %v1533_v47 }
 0x677   :  { %v1358_v48 = vpop.f32.mrb[16].mxu1 }
 0x678   :  { %v2017_v49 = vpop.f32.mrb[17].mxu1 }
 0x679   :  { %v1866_v49 = vld [vmem:[%s2638_s8] ss:$0 sm:$0xff] }
 0x67b   :  { %v1529_v50 = vpop.f32.mrb[18].mxu1 }
 0x67c   :  { %v2027_v51 = vpop.f32.mrb[19].mxu1  ;;  %1627 = vrot.lane.b32.xlu1 %v2475_v42, %s2279_s11  ;;  %v1536_v52 = vsel %vm370_vm2, %v1529_v50, -inf }
 0x67d   :  { %1537 = vmax.xlane.f32.xlu0 %v1536_v52 }
 0x693   :  { %1551 = vrot.lane.b32.xlu0 %v2477_v44, %s2279_s11 }
 0x6a0   :  { %862 = vadd.xlane.f32.xlu1 %v861_v14 }
 0x6a4   :  { %1208 = vadd.xlane.f32.xlu1 %v1207_v53 }
 0x6b2   :  { %865 = vadd.xlane.f32.xlu0 %v864_v54 }
 0x6b6   :  { %1205 = vadd.xlane.f32.xlu0 %v1204_v57 }
 0x6f8   :  { %v1535_v42 = vpop.xlane.xlu1 %1534 }
 0x6f9   :  { %v1539_v58 = vsub.f32 %v1451_v45, %v1535_v42 }
 0x6fb   :  { %v1541_v59 = vmul.f32 1.442695, %v1539_v58 }
 0x6fc   :  { %v1628_v61 = vpop.permute.xlu1 %1627 }
 0x6fd   :  { %2108 = vpow2.f32 %v1541_v59  ;;  %2034 = vmatpush3.msra.mxu1 %v1628_v61 }
 0x707   :  { %v2109_v44 = vpop.eup %2108 }
 0x708   :  { %v1545_v63 = vsel %vm370_vm2, %v2109_v44, 0.0 }
 0x709   :  { %1546 = vadd.xlane.f32.xlu0 %v1545_v63 }
 0x70a   :  { %v1538_v0 = vpop.xlane.xlu0 %1537 }
 0x70b   :  { %v1540_v1 = vsub.f32 %v1529_v50, %v1538_v0 }
 0x70d   :  { %v1543_v3 = vmul.f32 1.442695, %v1540_v1  ;;  %536 = vadd.xlane.f32.xlu0 %v535_v2 }
 0x70e   :  { %v1552_v4 = vpop.permute.xlu0 %1551 }
 0x70f   :  { %2110 = vpow2.f32 %v1543_v3  ;;  %2029 = vmatpush3.msra.mxu0 %v1552_v4 }
 0x710   :  { %2031 = vmatmul.mubr.msk.f32.vlgmr.msra.gmra.mrb[14].mxu0 %vm370_vm2, %v2109_v44 }
 0x719   :  { %v2111_v5 = vpop.eup %2110 }
 0x71a   :  { %2036 = vmatmul.mubr.msk.f32.vlgmr.msra.gmra.mrb[20].mxu1 %vm370_vm2, %v2111_v5  ;;  %v1548_v6 = vsel %vm370_vm2, %v2111_v5, 0.0 }
 0x71b   :  { %1549 = vadd.xlane.f32.xlu1 %v1548_v6 }
 0x71f   :  { %539 = vadd.xlane.f32.xlu1 %v538_v7 }
 0x72d   :  { %v863_v8 = vpop.xlane.xlu1 %862 }
 0x72e   :  { %2112 = vrcp.f32 %v863_v8 }
 0x731   :  { %v1209_v55 = vpop.xlane.xlu1 %1208 }
 0x732   :  { %2114 = vrcp.f32 %v1209_v55 }
 0x738   :  { %v2113_v9 = vpop.eup %2112 }
 0x739   :  { %v1023_v10 = vmul.f32 %v2113_v9, %v2549_v19 }
 0x73b   :  { %1027 = vrot.lane.b32.xlu0 %v1023_v10, %s2271_s22 }
 0x73c   :  { %v2115_v11 = vpop.eup %2114 }
 0x73d   :  { %v1365_v12 = vmul.f32 %v2115_v11, %v1358_v48 }
 0x73f   :  { %v866_v13 = vpop.xlane.xlu0 %865  ;;  %1370 = vrot.lane.b32.xlu0 %v1365_v12, %s2280_s13 }
 0x740   :  { %2116 = vrcp.f32 %v866_v13 }
 0x743   :  { %v1206_v15 = vpop.xlane.xlu0 %1205 }
 0x744   :  { %2118 = vrcp.f32 %v1206_v15 }
 0x74a   :  { %v2117_v16 = vpop.eup %2116 }
 0x74b   :  { %v1024_v56 = vmul.f32 %v2117_v16, %v2552_v24 }
 0x74d   :  { %1029 = vrot.lane.b32.xlu1 %v1024_v56, %s2271_s22 }
 0x74e   :  { %v2119_v17 = vpop.eup %2118 }
 0x74f   :  { %v1364_v18 = vmul.f32 %v2119_v17, %v2577_v41 }
 0x751   :  { %1368 = vrot.lane.b32.xlu1 %v1364_v18, %s2280_s13 }
 0x796   :  { %v1547_v19 = vpop.xlane.xlu0 %1546 }
 0x79a   :  { %v537_v20 = vpop.xlane.xlu0 %536 }
 0x79b   :  { %2120 = vrcp.f32 %v537_v20 }
 0x7a5   :  { %v2121_v21 = vpop.eup %2120 }
 0x7a6   :  { %v689_v22 = vmul.f32 %v2121_v21, %v2509_v60  ;;  %v1720_v60 = vld [vmem:[#allocation11] sm:$0xff] }
 0x7a7   :  { %v2073_v35 = vpack.c.bf16 %v1721_v34, %v1720_v60 }
 0x7a8   :  { %691 = vst.msk [vmem:[#allocation2] sm:$0xff] %vm370_vm2, %v689_v22  ;;  %v1550_v23 = vpop.xlane.xlu1 %1549 }
 0x7a9   :  { %2074 = vmatprep.subr.bf16.mxu0 %v2073_v35 }
 0x7aa   :  { %2076 = vmatpush3.bf16.msra.mxu0 %v2073_v35 }
 0x7ab   :  { %2078 = vmatprep.subr.bf16.mxu0 %v2077_v38 }
 0x7ac   :  { %v540_v25 = vpop.xlane.xlu1 %539 }
 0x7ad   :  { %2122 = vrcp.f32 %v540_v25  ;;  %v1028_v26 = vpop.permute.xlu0 %1027 }
 0x7ae   :  { %1034 = vst.msk [vmem:[#allocation2] sm:$0xff] %vm1033_vm3, %v1028_v26  ;;  %2124 = vrcp.f32 %v1547_v19  ;;  %2080 = vmatpush3.bf16.msra.mxu0 %v2077_v38 }
 0x7af   :  { %2126 = vrcp.f32 %v1550_v23 }
 0x7b1   :  { %v1371_v30 = vpop.permute.xlu0 %1370 }
 0x7b7   :  { %v2123_v24 = vpop.eup %2122 }
 0x7b8   :  { %v690_v27 = vmul.f32 %v2123_v24, %v2511_v62  ;;  %v2125_v36 = vpop.eup %2124 }
 0x7b9   :  { %v2127_v39 = vpop.eup %2126 }
 0x7ba   :  { %692 = vst.msk [vmem:[#allocation2 + $0x8] sm:$0xff] %vm370_vm2, %v690_v27 }
 0x7bf   :  { %v1030_v28 = vpop.permute.xlu1 %1029 }
 0x7c0   :  { %1035 = vst.msk [vmem:[#allocation2 + $0x8] sm:$0xff] %vm1033_vm3, %v1030_v28 }
 0x7c1   :  { %1376 = vst.msk [vmem:[#allocation2 + $0x8] sm:$0xff] %vm1374_vm4, %v1371_v30 }
 0x7c3   :  { %v1369_v33 = vpop.permute.xlu1 %1368 }
 0x7c4   :  { %1375 = vst.msk [vmem:[#allocation2] sm:$0xff] %vm1374_vm4, %v1369_v33 }
 0x7e3   :  { %v1623_v29 = vpop.f32.mrb[14].mxu0 }
 0x7e4   :  { %v1705_v32 = vmul.f32 %v2125_v36, %v1623_v29  ;;  %v2032_v62 = vpop.f32.mrb[15].mxu0 }
 0x7e6   :  { %1709 = vrot.lane.b32.xlu1 %v1705_v32, %s2281_s1 }
 0x7ed   :  { %v1699_v40 = vpop.f32.mrb[20].mxu1 }
 0x7ee   :  { %v1706_v41 = vmul.f32 %v2127_v39, %v1699_v40  ;;  %v2037_v43 = vpop.f32.mrb[21].mxu1 }
 0x7f0   :  { %1711 = vrot.lane.b32.xlu0 %v1706_v41, %s2281_s1 }
 0x858   :  { %v1710_v45 = vpop.permute.xlu1 %1709 }
 0x859   :  { %1716 = vst.msk [vmem:[#allocation2] sm:$0xff] %vm1715_vm5, %v1710_v45 }
 0x860   :  { %v1718_v46 = vld [vmem:[#allocation2] sm:$0xff] }
 0x861   :  { %2046 = vmatprep.mubr.msk.f32.mxu0 %vm114_vm0, %v1718_v46 }
 0x862   :  { %v1712_v47 = vpop.permute.xlu0 %1711 }
 0x863   :  { %1717 = vst.msk [vmem:[#allocation2 + $0x8] sm:$0xff] %vm1715_vm5, %v1712_v47 }
 0x86a   :  { %v1719_v48 = vld [vmem:[#allocation2 + $0x8] sm:$0xff] }
 0x86b   :  { %2047 = vmatmul.mubr.msk.f32.vlgmr.msra.gmra.mrb[16].mxu0 %vm114_vm0, %v1719_v48 }
 0x93e   :  { %v2048_v50 = vpop.f32.mrb[16].mxu0 }
 0x93f   :  { %v1809_v51 = vadd.f32 %v2048_v50, %v1866_v49  ;;  %v1803_v52 = vpop.f32.mrb[17].mxu0 }
 0x940   :  { %v1804_v14 = vadd.f32 %v1866_v49, %v1803_v52 }
 0x941   :  { %1813 = vst.msk [vmem:[#allocation12 + $0x8] sm:$0xff] %vm114_vm0, %v1809_v51 }
 0x942   :  { %1812 = vst.msk [vmem:[#allocation12] sm:$0xff] %vm114_vm0, %v1804_v14 }
 0x943   :  { %2249 = shalt.err (!%p2246_p2)
}
 0x944   :  { %s2250_s19 = scalar_lea.hbm %s2639_s9, 256 }
 0x945   :  { %p2251_p3 = scmp.ne.s32.totalorder %s2639_s9, %s2250_s19  ;;  %p2254_p4 = scmp.lt.u32.totalorder %s2250_s19, %s2639_s9 }
 0x947   :  { %p2256_p5 = pnand %p2254_p4, %p2251_p3 }
 0x949   :  { %2259 = shalt.err (!%p2256_p5)
}
 0x94a   :  { %1825 = dma.vmem_to_hbm [thread:$0]  %s1820_s15, 256, %s2639_s9, [#allocation5], %s2270_s21, %s2270_s21, %s2271_s22  }
 0x94b   :  { %2266 = dma.done.wait [#allocation5], 256  }
 0x94c   :  { %2267 = vsyncadd [#allocation5], 4294967040 }
 0x94d   :  { %1829 = vsyncpa [#allocation4], 1 }
 0x94e   :  { %1830 = vsyncpa [#allocation7], 1 }
 0x94f   :  { %1831 = vsyncpa [#allocation10], 1 }
 0x950   :  { %1832 = vsyncpa [#allocation5], 1 }

// kernel: tpu_custom_call.1
= control target key start
LH: loop header
LB: loop body
LE: loop exit
PB: predicated region body
PF: predicated region fallthrough
CT: control target
= control target key end

     0   :  { %14 = vsyncpa [#allocation4], 0  ;;  %s2630_s0 = inlined_call_operand.hbm [shape: f32[2,8,32], index: 0, kind: input, shape index: {}]   ;;  %s2631_s1 = inlined_call_operand.hbm [shape: f32[32,32], index: 1, kind: input, shape index: {}]   ;;  %s2632_s2 = inlined_call_operand.vmem [shape: f32[1,32], index: 2, kind: input, shape index: {}]   ;;  %s2633_s3 = inlined_call_operand.hbm [shape: f32[32,32], index: 3, kind: input, shape index: {}]   ;;  %s2634_s4 = inlined_call_operand.vmem [shape: f32[1,32], index: 4, kind: input, shape index: {}]   ;;  %s2635_s5 = inlined_call_operand.hbm [shape: f32[32,32], index: 5, kind: input, shape index: {}]   ;;  %s2636_s6 = inlined_call_operand.vmem [shape: f32[1,32], index: 6, kind: input, shape index: {}]   ;;  %s2637_s7 = inlined_call_operand.hbm [shape: f32[32,32], index: 7, kind: input, shape index: {}]   ;;  %s2638_s8 = inlined_call_operand.vmem [shape: f32[1,32], index: 8, kind: input, shape index: {}]   ;;  %s2639_s9 = inlined_call_operand.hbm [shape: f32[2,8,32], index: 9, kind: output, shape index: {}]  }
   0x1   :  { %15 = vsyncpa [#allocation7], 0 }
   0x2   :  { %16 = vsyncpa [#allocation10], 0 }
   0x3   :  { %17 = vsyncpa [#allocation5], 0  ;;  %s2268_s30 = smov [#allocation6]   ;;  %s2269_s11 = smov [#allocation9]  }
   0x4   :  { %s35_s10 = sshll.u32 %s2268_s30, 4  ;;  %s63_s12 = sshll.u32 %s2269_s11, 4  ;;  %s36_s10 = int_to_ptr.vmem [resolvable:$true] %s35_s10  ;;  %s2333_s12 = int_to_ptr.vmem [resolvable:$true] %s63_s12 }
   0x5   :  { %s2128_s15 = scalar_lea.hbm %s2631_s1, 512 }
   0x6   :  { %p2129_p0 = scmp.ne.s32.totalorder %s2631_s1, %s2128_s15  ;;  %p2132_p1 = scmp.lt.u32.totalorder %s2128_s15, %s2631_s1 }
   0x8   :  { %p2134_p2 = pnand %p2132_p1, %p2129_p0 }
   0xa   :  { %2137 = shalt.err (!%p2134_p2)
}
   0xb   :  { %s2138_s20 = scalar_lea.vmem %s36_s10, 512  ;;  %p2143_p4 = scmp.lt.s32.totalorder %s36_s10, %s36_s10 }
   0xc   :  { %p2139_p3 = scmp.ne.s32.totalorder %s36_s10, %s2138_s20  ;;  %p2144_p5 = scmp.lt.s32.totalorder %s2138_s20, %s2138_s20 }
   0xe   :  { %p2145_p6 = por %p2144_p5, %p2143_p4 }
  0x10   :  { %p2146_p7 = pnand %p2145_p6, %p2139_p3 }
  0x12   :  { %2149 = shalt.err (!%p2146_p7)
}
  0x13   :  { %s2270_s21 = smov 128   ;;  %s2271_s22 = smov 8  }
  0x14   :  { %41 = dma.hbm_to_vmem [thread:$0]  %s2631_s1, 512, %s36_s10, [#allocation7], %s2270_s21, %s2270_s21, %s2271_s22  }
  0x15   :  { %s2150_s27 = scalar_lea.hbm %s2635_s5, 512 }
  0x16   :  { %p2151_p8 = scmp.ne.s32.totalorder %s2635_s5, %s2150_s27  ;;  %p2154_p9 = scmp.lt.u32.totalorder %s2150_s27, %s2635_s5 }
  0x18   :  { %p2156_p10 = pnand %p2154_p9, %p2151_p8 }
  0x1a   :  { %2159 = shalt.err (!%p2156_p10)
}
  0x1b   :  { %s2160_s13 = scalar_lea.vmem %s2333_s12, 512  ;;  %p2165_p12 = scmp.lt.s32.totalorder %s2333_s12, %s2333_s12 }
  0x1c   :  { %p2161_p11 = scmp.ne.s32.totalorder %s2333_s12, %s2160_s13  ;;  %p2166_p13 = scmp.lt.s32.totalorder %s2160_s13, %s2160_s13 }
  0x1e   :  { %p2167_p0 = por %p2166_p13, %p2165_p12 }
  0x20   :  { %p2168_p1 = pnand %p2167_p0, %p2161_p11 }
  0x22   :  { %2171 = shalt.err (!%p2168_p1)
}
  0x23   :  { %69 = dma.hbm_to_vmem [thread:$0]  %s2635_s5, 512, %s2333_s12, [#allocation10], %s2270_s21, %s2270_s21, %s2271_s22  }
  0x24   :  { %s2272_s14 = smov [#allocation3]   ;;  %s2273_s16 = smov [#allocation8]  }
  0x25   :  { %s23_s15 = sshll.u32 %s2272_s14, 4  ;;  %s49_s17 = sshll.u32 %s2273_s16, 4  ;;  %s24_s15 = int_to_ptr.vmem [resolvable:$true] %s23_s15  ;;  %s2370_s17 = int_to_ptr.vmem [resolvable:$true] %s49_s17 }
  0x26   :  { %s2172_s20 = scalar_lea.hbm %s2630_s0, 256 }
  0x27   :  { %p2173_p2 = scmp.ne.s32.totalorder %s2630_s0, %s2172_s20  ;;  %p2176_p3 = scmp.lt.u32.totalorder %s2172_s20, %s2630_s0 }
  0x29   :  { %p2178_p4 = pnand %p2176_p3, %p2173_p2 }
  0x2b   :  { %2181 = shalt.err (!%p2178_p4)
}
  0x2c   :  { %s2182_s5 = scalar_lea.vmem %s24_s15, 256  ;;  %p2187_p6 = scmp.lt.s32.totalorder %s24_s15, %s24_s15 }
  0x2d   :  { %p2183_p5 = scmp.ne.s32.totalorder %s24_s15, %s2182_s5  ;;  %p2188_p7 = scmp.lt.s32.totalorder %s2182_s5, %s2182_s5 }
  0x2f   :  { %p2189_p8 = por %p2188_p7, %p2187_p6 }
  0x31   :  { %p2190_p9 = pnand %p2189_p8, %p2183_p5 }
  0x33   :  { %2193 = shalt.err (!%p2190_p9)
}
  0x34   :  { %29 = dma.hbm_to_vmem [thread:$0]  %s2630_s0, 256, %s24_s15, [#allocation4], %s2270_s21, %s2270_s21, %s2271_s22  }
  0x35   :  { %s2194_s30 = scalar_lea.hbm %s2633_s3, 512 }
  0x36   :  { %p2195_p10 = scmp.ne.s32.totalorder %s2633_s3, %s2194_s30  ;;  %p2198_p11 = scmp.lt.u32.totalorder %s2194_s30, %s2633_s3 }
  0x38   :  { %p2200_p12 = pnand %p2198_p11, %p2195_p10 }
  0x3a   :  { %2203 = shalt.err (!%p2200_p12)
}
  0x3b   :  { %s2204_s14 = scalar_lea.vmem %s2370_s17, 512  ;;  %p2209_p0 = scmp.lt.s32.totalorder %s2370_s17, %s2370_s17 }
  0x3c   :  { %p2205_p13 = scmp.ne.s32.totalorder %s2370_s17, %s2204_s14  ;;  %p2210_p1 = scmp.lt.s32.totalorder %s2204_s14, %s2204_s14 }
  0x3e   :  { %p2211_p2 = por %p2210_p1, %p2209_p0 }
  0x40   :  { %p2212_p3 = pnand %p2211_p2, %p2205_p13 }
  0x42   :  { %2215 = shalt.err (!%p2212_p3)
}
  0x43   :  { %55 = dma.hbm_to_vmem [thread:$0]  %s2633_s3, 512, %s2370_s17, [#allocation7], %s2270_s21, %s2270_s21, %s2271_s22  }
  0x44   :  { %s2274_s16 = smov [#allocation11]   ;;  %s2216_s23 = scalar_lea.hbm %s2637_s7, 512 }
  0x45   :  { %s77_s18 = sshll.u32 %s2274_s16, 4  ;;  %p2217_p4 = scmp.ne.s32.totalorder %s2637_s7, %s2216_s23  ;;  %s78_s18 = int_to_ptr.vmem [resolvable:$true] %s77_s18 }
  0x46   :  { %p2220_p5 = scmp.lt.u32.totalorder %s2216_s23, %s2637_s7 }
  0x48   :  { %p2222_p6 = pnand %p2220_p5, %p2217_p4 }
  0x4a   :  { %2225 = shalt.err (!%p2222_p6)
}
  0x4b   :  { %s2226_s12 = scalar_lea.vmem %s78_s18, 512  ;;  %p2231_p8 = scmp.lt.s32.totalorder %s78_s18, %s78_s18 }
  0x4c   :  { %p2227_p7 = scmp.ne.s32.totalorder %s78_s18, %s2226_s12  ;;  %p2232_p9 = scmp.lt.s32.totalorder %s2226_s12, %s2226_s12 }
  0x4e   :  { %p2233_p10 = por %p2232_p9, %p2231_p8 }
  0x50   :  { %p2234_p11 = pnand %p2233_p10, %p2227_p7 }
  0x52   :  { %2237 = shalt.err (!%p2234_p11)
}
  0x53   :  { %83 = dma.hbm_to_vmem [thread:$0]  %s2637_s7, 512, %s78_s18, [#allocation10], %s2270_s21, %s2270_s21, %s2271_s22  }
  0x54   :  { %2260 = dma.done.wait [#allocation4], 256  }
  0x55   :  { %2261 = vsyncadd [#allocation4], 4294967040 }
  0x56   :  { %2262 = dma.done.wait [#allocation7], 1024  }
  0x57   :  { %2263 = vsyncadd [#allocation7], 4294966272 }
  0x58   :  { %2264 = dma.done.wait [#allocation10], 1024  }
  0x59   :  { %2265 = vsyncadd [#allocation10], 4294966272  ;;  %v103_v0 = vld [vmem:[#allocation6] sm:$0xff]  ;;  %v104_v1 = vld [vmem:[#allocation6 + $0x8] sm:$0xff]  ;;  %vm114_vm0 = vcmask 261120   ;;  %v2275_v14 = vmov 0.0  }
  0x5a   :  { %v196_v2 = vld [vmem:[#allocation8] sm:$0xff]  ;;  %v2049_v3 = vpack.c.bf16 %v104_v1, %v103_v0  ;;  %v197_v4 = vld [vmem:[#allocation8 + $0x8] sm:$0xff]  ;;  %v105_v5 = vld [vmem:[#allocation6 + $0x10] sm:$0xff]  ;;  %vm2276_vm1 = vmmov 0   ;;  %vm370_vm2 = vcmask 64512   ;;  %s2277_s30 = smov 120  }
  0x5b   :  { %v106_v6 = vld [vmem:[#allocation6 + $0x18] sm:$0xff]  ;;  %v2057_v7 = vpack.c.bf16 %v197_v4, %v196_v2  ;;  %v198_v9 = vld [vmem:[#allocation8 + $0x10] sm:$0xff]  ;;  %v282_v15 = vld [vmem:[#allocation9] sm:$0xff]  ;;  %s2279_s11 = smov 104   ;;  %s2280_s13 = smov 16   ;;  %vm1033_vm3 = vcmask 130112  }
  0x5c   :  { %v2053_v8 = vpack.c.bf16 %v106_v6, %v105_v5  ;;  %v199_v10 = vld [vmem:[#allocation8 + $0x18] sm:$0xff]  ;;  %v101_v11 = vld [vmem:[#allocation3] sm:$0xff]  ;;  %2050 = vmatprep.subr.bf16.mxu0 %v2049_v3  ;;  %v283_v16 = vld [vmem:[#allocation9 + $0x8] sm:$0xff]  ;;  %vm1374_vm4 = vcmask 195712   ;;  %s2281_s1 = smov 24   ;;  %vm1715_vm5 = vcmask 261312  }
  0x5d   :  { %v2061_v12 = vpack.c.bf16 %v199_v10, %v198_v9  ;;  %1933 = vmatprep.mubr.msk.f32.mxu0 %vm114_vm0, %v101_v11  ;;  %2058 = vmatprep.subr.bf16.mxu1 %v2057_v7  ;;  %v102_v13 = vld [vmem:[#allocation3 + $0x8] sm:$0xff]  ;;  %v284_v17 = vld [vmem:[#allocation9 + $0x10] sm:$0xff]  ;;  %v2065_v18 = vpack.c.bf16 %v283_v16, %v282_v15  ;;  %v1833_v21 = vld [vmem:[%s2632_s2] ss:$0 sm:$0xff]  ;;  %s2282_s0 = smov [#allocation12]  }
  0x5e   :  { %2052 = vmatpush3.bf16.msra.mxu0 %v2049_v3  ;;  %2060 = vmatpush3.bf16.msra.mxu1 %v2057_v7  ;;  %v285_v19 = vld [vmem:[#allocation9 + $0x18] sm:$0xff]  ;;  %v1836_v23 = vld [vmem:[%s2634_s4] ss:$0 sm:$0xff]  ;;  %s1819_s15 = sshll.u32 %s2282_s0, 4  ;;  %s1820_s15 = int_to_ptr.vmem [resolvable:$true] %s1819_s15 }
  0x5f   :  { %2054 = vmatprep.subr.bf16.mxu0 %v2053_v8  ;;  %2062 = vmatprep.subr.bf16.mxu1 %v2061_v12  ;;  %v2069_v20 = vpack.c.bf16 %v285_v19, %v284_v17  ;;  %v1839_v41 = vld [vmem:[%s2636_s6] ss:$0 sm:$0xff]  ;;  %s2278_s6 = smov 112   ;;  %s2238_s16 = scalar_lea.vmem %s1820_s15, 256 }
  0x60   :  { %1944 = vmatprep.mubr.msk.f32.mxu1 %vm114_vm0, %v101_v11  ;;  %p2239_p12 = scmp.ne.s32.totalorder %s1820_s15, %s2238_s16  ;;  %p2243_p13 = scmp.lt.s32.totalorder %s1820_s15, %s1820_s15 }
  0x61   :  { %p2244_p0 = scmp.lt.s32.totalorder %s2238_s16, %s2238_s16 }
  0x62   :  { %2056 = vmatpush3.bf16.msra.mxu0 %v2053_v8  ;;  %2064 = vmatpush3.bf16.msra.mxu1 %v2061_v12 }
  0x63   :  { %1958 = vmatprep.subr.mxu1 %v2275_v14  ;;  %2066 = vmatprep.subr.bf16.mxu0 %v2065_v18  ;;  %p2245_p1 = por %p2244_p0, %p2243_p13 }
  0x65   :  { %1934 = vmatmul.mubr.msk.f32.vlgmr.msra.gmra.mrb[0].mxu0 %vm114_vm0, %v102_v13  ;;  %1945 = vmatmul.mubr.msk.f32.vlgmr.msra.gmra.mrb[0].mxu1 %vm114_vm0, %v102_v13  ;;  %p2246_p2 = pnand %p2245_p1, %p2239_p12 }
  0x66   :  { %1955 = vmatprep.mubr.msk.f32.mxu0 %vm114_vm0, %v101_v11  ;;  %1960 = vmatprep.mubr.msk.f32.mxu1 %vm2276_vm1, %v2275_v14 }
  0x67   :  { %2068 = vmatpush3.bf16.msra.mxu0 %v2065_v18 }
  0x68   :  { %2070 = vmatprep.subr.bf16.mxu0 %v2069_v20 }
  0x6b   :  { %2072 = vmatpush3.bf16.msra.mxu0 %v2069_v20 }
  0x6c   :  { %1978 = vmatprep.subr.mxu0 %v2275_v14 }
  0x6e   :  { %1956 = vmatmul.mubr.msk.f32.vlgmr.msra.gmra.mrb[2].mxu0 %vm114_vm0, %v102_v13 }
  0x6f   :  { %1980 = vmatprep.mubr.msk.f32.mxu0 %vm2276_vm1, %v2275_v14 }
 0x138   :  { %v1935_v22 = vpop.f32.mrb[0].mxu0  ;;  %v1946_v24 = vpop.f32.mrb[0].mxu1 }
 0x139   :  { %v187_v25 = vpop.f32.mrb[1].mxu0  ;;  %v273_v27 = vpop.f32.mrb[1].mxu1  ;;  %v193_v30 = vadd.f32 %v1935_v22, %v1833_v21  ;;  %v2449_v31 = vadd.f32 %v1946_v24, %v1836_v23 }
 0x13a   :  { %v188_v26 = vadd.f32 %v1833_v21, %v187_v25  ;;  %v2440_v28 = vadd.f32 %v1836_v23, %v273_v27 }
 0x13b   :  { %v2457_v32 = vmul.f32 0.35355338, %v193_v30 }
 0x13c   :  { %v2442_v29 = vmul.f32 0.35355338, %v188_v26  ;;  %695 = vrot.lane.b32.xlu1 %v2440_v28, %s2277_s30  ;;  %1959 = vmatpush3.xpose.msk.msra.mxu1 %vm370_vm2, %v2440_v28 }
 0x13d   :  { %1963 = vmatprep.subr.mxu1 %v2275_v14 }
 0x13f   :  { %1961 = vmatmul.mubr.msk.f32.vlgmr.msra.gmra.mrb[2].mxu1 %vm370_vm2, %v2442_v29 }
 0x140   :  { %773 = vrot.lane.b32.xlu1 %v2449_v31, %s2277_s30  ;;  %1964 = vmatpush3.xpose.msk.msra.mxu1 %vm370_vm2, %v2449_v31 }
 0x141   :  { %1965 = vmatprep.mubr.msk.f32.mxu1 %vm2276_vm1, %v2275_v14  ;;  %1968 = vmatprep.subr.mxu1 %v2275_v14  ;;  %v1957_v40 = vpop.f32.mrb[2].mxu0 }
 0x142   :  { %v2475_v42 = vadd.f32 %v1957_v40, %v1839_v41  ;;  %v359_v43 = vpop.f32.mrb[3].mxu0 }
 0x143   :  { %1966 = vmatmul.mubr.msk.f32.vlgmr.msra.gmra.mrb[4].mxu1 %vm370_vm2, %v2457_v32  ;;  %v2477_v44 = vadd.f32 %v1839_v41, %v359_v43 }
 0x144   :  { %771 = vrot.lane.b32.xlu1 %v2457_v32, %s2277_s30  ;;  %1970 = vmatprep.mubr.msk.f32.mxu1 %vm2276_vm1, %v2275_v14 }
 0x145   :  { %1969 = vmatpush3.msra.mxu1 %v2477_v44 }
 0x146   :  { %1973 = vmatprep.subr.mxu1 %v2275_v14 }
 0x148   :  { %868 = vrot.lane.b32.xlu1 %v2477_v44, %s2277_s30 }
 0x1ae   :  { %v696_v33 = vpop.permute.xlu1 %695 }
 0x1af   :  { %1979 = vmatpush3.xpose.msk.msra.mxu0 %vm370_vm2, %v696_v33 }
 0x1b0   :  { %1988 = vmatprep.subr.mxu0 %v2275_v14 }
 0x1b2   :  { %v774_v45 = vpop.permute.xlu1 %773 }
 0x1b6   :  { %v772_v48 = vpop.permute.xlu1 %771 }
 0x1ba   :  { %v869_v53 = vpop.permute.xlu1 %868 }
 0x212   :  { %v443_v34 = vpop.f32.mrb[2].mxu1 }
 0x213   :  { %v1962_v35 = vpop.f32.mrb[3].mxu1  ;;  %v523_v36 = vsel %vm370_vm2, %v443_v34, -inf }
 0x214   :  { %524 = vmax.xlane.f32.xlu0 %v523_v36 }
 0x216   :  { %v519_v37 = vpop.f32.mrb[4].mxu1 }
 0x217   :  { %v1967_v38 = vpop.f32.mrb[5].mxu1  ;;  %v526_v39 = vsel %vm370_vm2, %v519_v37, -inf }
 0x218   :  { %527 = vmax.xlane.f32.xlu0 %v526_v39 }
 0x22e   :  { %693 = vrot.lane.b32.xlu0 %v2442_v29, %s2277_s30 }
 0x2a1   :  { %v525_v46 = vpop.xlane.xlu0 %524 }
 0x2a2   :  { %v529_v47 = vsub.f32 %v443_v34, %v525_v46 }
 0x2a4   :  { %v531_v49 = vmul.f32 1.442695, %v529_v47 }
 0x2a5   :  { %v528_v50 = vpop.xlane.xlu0 %527 }
 0x2a6   :  { %2096 = vpow2.f32 %v531_v49  ;;  %v530_v51 = vsub.f32 %v519_v37, %v528_v50 }
 0x2a8   :  { %v533_v52 = vmul.f32 1.442695, %v530_v51 }
 0x2a9   :  { %v694_v54 = vpop.permute.xlu0 %693 }
 0x2aa   :  { %2098 = vpow2.f32 %v533_v52  ;;  %1981 = vmatmul.mubr.msk.f32.vlgmr.msra.gmra.mrb[4].mxu0 %vm370_vm2, %v694_v54 }
 0x2ab   :  { %1989 = vmatpush3.msra.mxu0 %v869_v53  ;;  %1990 = vmatprep.mubr.msk.f32.mxu0 %vm2276_vm1, %v2275_v14 }
 0x2ac   :  { %1998 = vmatprep.subr.mxu0 %v2275_v14 }
 0x2b0   :  { %v2489_v55 = vpop.eup %2096 }
 0x2b1   :  { %1971 = vmatmul.mubr.msk.f32.vlgmr.msra.gmra.mrb[6].mxu1 %vm370_vm2, %v2489_v55 }
 0x2b2   :  { %1974 = vmatpush3.msra.mxu1 %v2475_v42  ;;  %1975 = vmatprep.mubr.msk.f32.mxu1 %vm2276_vm1, %v2275_v14 }
 0x2b3   :  { %1983 = vmatprep.subr.mxu1 %v2275_v14 }
 0x2b4   :  { %v2497_v56 = vpop.eup %2098 }
 0x2b5   :  { %1976 = vmatmul.mubr.msk.f32.vlgmr.msra.gmra.mrb[8].mxu1 %vm370_vm2, %v2497_v56 }
 0x2b6   :  { %1985 = vmatprep.mubr.msk.f32.mxu1 %vm2276_vm1, %v2275_v14 }
 0x2b9   :  { %1984 = vmatpush3.xpose.msk.msra.mxu1 %vm370_vm2, %v774_v45 }
 0x2ba   :  { %1993 = vmatprep.subr.mxu1 %v2275_v14 }
 0x2bc   :  { %1986 = vmatmul.mubr.msk.f32.vlgmr.msra.gmra.mrb[10].mxu1 %vm370_vm2, %v772_v48 }
 0x2bd   :  { %1995 = vmatprep.mubr.msk.f32.mxu1 %vm2276_vm1, %v2275_v14 }
 0x37d   :  { %v767_v57 = vpop.f32.mrb[4].mxu0 }
 0x37e   :  { %v1982_v58 = vpop.f32.mrb[5].mxu0  ;;  %v849_v59 = vsel %vm370_vm2, %v767_v57, -inf }
 0x37f   :  { %850 = vmax.xlane.f32.xlu1 %v849_v59 }
 0x384   :  { %v2509_v60 = vpop.f32.mrb[6].mxu1 }
 0x385   :  { %v1972_v61 = vpop.f32.mrb[7].mxu1 }
 0x388   :  { %v2511_v62 = vpop.f32.mrb[8].mxu1 }
 0x389   :  { %v1977_v63 = vpop.f32.mrb[9].mxu1 }
 0x38f   :  { %v845_v0 = vpop.f32.mrb[10].mxu1 }
 0x390   :  { %v1987_v1 = vpop.f32.mrb[11].mxu1  ;;  %1038 = vrot.lane.b32.xlu1 %v2440_v28, %s2278_s6  ;;  %v852_v2 = vsel %vm370_vm2, %v845_v0, -inf }
 0x391   :  { %853 = vmax.xlane.f32.xlu0 %v852_v2  ;;  %v535_v2 = vsel %vm370_vm2, %v2489_v55, 0.0 }
 0x394   :  { %1116 = vrot.lane.b32.xlu1 %v2449_v31, %s2278_s6 }
 0x398   :  { %1036 = vrot.lane.b32.xlu1 %v2442_v29, %s2278_s6 }
 0x39c   :  { %1114 = vrot.lane.b32.xlu1 %v2457_v32, %s2278_s6 }
 0x3a0   :  { %1286 = vrot.lane.b32.xlu1 %v2475_v42, %s2278_s6 }
 0x3a4   :  { %1379 = vrot.lane.b32.xlu1 %v2440_v28, %s2279_s11 }
 0x3a7   :  { %945 = vrot.lane.b32.xlu0 %v2475_v42, %s2277_s30 }
 0x3ab   :  { %1210 = vrot.lane.b32.xlu0 %v2477_v44, %s2278_s6 }
 0x40c   :  { %v851_v3 = vpop.xlane.xlu1 %850 }
 0x40d   :  { %v855_v4 = vsub.f32 %v767_v57, %v851_v3 }
 0x40f   :  { %v857_v5 = vmul.f32 1.442695, %v855_v4 }
 0x410   :  { %v1039_v6 = vpop.permute.xlu1 %1038 }
 0x411   :  { %2100 = vpow2.f32 %v857_v5 }
 0x414   :  { %v1117_v7 = vpop.permute.xlu1 %1116 }
 0x418   :  { %v1037_v10 = vpop.permute.xlu1 %1036 }
 0x41b   :  { %v2524_v8 = vpop.eup %2100 }
 0x41c   :  { %1991 = vmatmul.mubr.msk.f32.vlgmr.msra.gmra.mrb[6].mxu0 %vm370_vm2, %v2524_v8  ;;  %v1115_v16 = vpop.permute.xlu1 %1114 }
 0x41d   :  { %1999 = vmatpush3.xpose.msk.msra.mxu0 %vm370_vm2, %v1039_v6  ;;  %2000 = vmatprep.mubr.msk.f32.mxu0 %vm2276_vm1, %v2275_v14 }
 0x41e   :  { %v854_v9 = vpop.xlane.xlu0 %853  ;;  %2008 = vmatprep.subr.mxu0 %v2275_v14 }
 0x41f   :  { %v856_v11 = vsub.f32 %v845_v0, %v854_v9 }
 0x420   :  { %2001 = vmatmul.mubr.msk.f32.vlgmr.msra.gmra.mrb[8].mxu0 %vm370_vm2, %v1037_v10  ;;  %v1287_v18 = vpop.permute.xlu1 %1286 }
 0x421   :  { %v859_v12 = vmul.f32 1.442695, %v856_v11  ;;  %2010 = vmatprep.mubr.msk.f32.mxu0 %vm2276_vm1, %v2275_v14 }
 0x422   :  { %v946_v13 = vpop.permute.xlu0 %945 }
 0x423   :  { %2102 = vpow2.f32 %v859_v12  ;;  %1994 = vmatpush3.msra.mxu1 %v946_v13 }
 0x424   :  { %2003 = vmatprep.subr.mxu1 %v2275_v14  ;;  %v1380_v30 = vpop.permute.xlu1 %1379 }
 0x426   :  { %v1211_v15 = vpop.permute.xlu0 %1210 }
 0x427   :  { %2009 = vmatpush3.msra.mxu0 %v1211_v15 }
 0x428   :  { %2018 = vmatprep.subr.mxu0 %v2275_v14 }
 0x42d   :  { %v2537_v17 = vpop.eup %2102 }
 0x42e   :  { %1996 = vmatmul.mubr.msk.f32.vlgmr.msra.gmra.mrb[12].mxu1 %vm370_vm2, %v2537_v17  ;;  %v864_v54 = vsel %vm370_vm2, %v2537_v17, 0.0 }
 0x42f   :  { %2004 = vmatpush3.xpose.msk.msra.mxu1 %vm370_vm2, %v1117_v7  ;;  %2005 = vmatprep.mubr.msk.f32.mxu1 %vm2276_vm1, %v2275_v14  ;;  %v538_v7 = vsel %vm370_vm2, %v2497_v56, 0.0 }
 0x430   :  { %2013 = vmatprep.subr.mxu1 %v2275_v14 }
 0x432   :  { %2006 = vmatmul.mubr.msk.f32.vlgmr.msra.gmra.mrb[14].mxu1 %vm370_vm2, %v1115_v16 }
 0x433   :  { %2014 = vmatpush3.msra.mxu1 %v1287_v18  ;;  %2015 = vmatprep.mubr.msk.f32.mxu1 %vm2276_vm1, %v2275_v14 }
 0x434   :  { %2023 = vmatprep.subr.mxu1 %v2275_v14 }
 0x4ef   :  { %v2549_v19 = vpop.f32.mrb[6].mxu0 }
 0x4f0   :  { %v1992_v20 = vpop.f32.mrb[7].mxu0 }
 0x4f3   :  { %v1110_v21 = vpop.f32.mrb[8].mxu0 }
 0x4f4   :  { %v2002_v22 = vpop.f32.mrb[9].mxu0  ;;  %v1192_v23 = vsel %vm370_vm2, %v1110_v21, -inf }
 0x4f5   :  { %1193 = vmax.xlane.f32.xlu1 %v1192_v23 }
 0x501   :  { %v2552_v24 = vpop.f32.mrb[12].mxu1 }
 0x502   :  { %v1997_v25 = vpop.f32.mrb[13].mxu1 }
 0x505   :  { %v1188_v26 = vpop.f32.mrb[14].mxu1 }
 0x506   :  { %v2007_v27 = vpop.f32.mrb[15].mxu1  ;;  %1377 = vrot.lane.b32.xlu1 %v2442_v29, %s2279_s11  ;;  %v1195_v28 = vsel %vm370_vm2, %v1188_v26, -inf }
 0x507   :  { %1196 = vmax.xlane.f32.xlu0 %v1195_v28 }
 0x51d   :  { %1457 = vrot.lane.b32.xlu0 %v2449_v31, %s2279_s11 }
 0x521   :  { %1455 = vrot.lane.b32.xlu0 %v2457_v32, %s2279_s11 }
 0x582   :  { %v1194_v33 = vpop.xlane.xlu1 %1193 }
 0x583   :  { %v1198_v34 = vsub.f32 %v1110_v21, %v1194_v33 }
 0x585   :  { %v1200_v35 = vmul.f32 1.442695, %v1198_v34  ;;  %v1721_v34 = vld [vmem:[#allocation11 + $0x8] sm:$0xff] }
 0x586   :  { %v1378_v31 = vpop.permute.xlu1 %1377 }
 0x587   :  { %2104 = vpow2.f32 %v1200_v35 }
 0x591   :  { %v2105_v36 = vpop.eup %2104 }
 0x592   :  { %2011 = vmatmul.mubr.msk.f32.vlgmr.msra.gmra.mrb[10].mxu0 %vm370_vm2, %v2105_v36  ;;  %v1204_v57 = vsel %vm370_vm2, %v2105_v36, 0.0 }
 0x593   :  { %2019 = vmatpush3.xpose.msk.msra.mxu0 %vm370_vm2, %v1380_v30  ;;  %2020 = vmatprep.mubr.msk.f32.mxu0 %vm2276_vm1, %v2275_v14 }
 0x594   :  { %v1197_v29 = vpop.xlane.xlu0 %1196  ;;  %2028 = vmatprep.subr.mxu0 %v2275_v14 }
 0x595   :  { %v1199_v37 = vsub.f32 %v1188_v26, %v1197_v29 }
 0x596   :  { %2021 = vmatmul.mubr.msk.f32.vlgmr.msra.gmra.mrb[12].mxu0 %vm370_vm2, %v1378_v31  ;;  %v1722_v31 = vld [vmem:[#allocation11 + $0x10] sm:$0xff] }
 0x597   :  { %v1202_v32 = vmul.f32 1.442695, %v1199_v37  ;;  %2030 = vmatprep.mubr.msk.f32.mxu0 %vm2276_vm1, %v2275_v14  ;;  %v1723_v37 = vld [vmem:[#allocation11 + $0x18] sm:$0xff] }
 0x598   :  { %v1458_v38 = vpop.permute.xlu0 %1457 }
 0x599   :  { %2106 = vpow2.f32 %v1202_v32 }
 0x59c   :  { %v1456_v40 = vpop.permute.xlu0 %1455 }
 0x5a3   :  { %v2107_v39 = vpop.eup %2106 }
 0x5a4   :  { %2016 = vmatmul.mubr.msk.f32.vlgmr.msra.gmra.mrb[16].mxu1 %vm370_vm2, %v2107_v39  ;;  %v1207_v53 = vsel %vm370_vm2, %v2107_v39, 0.0 }
 0x5a5   :  { %2024 = vmatpush3.xpose.msk.msra.mxu1 %vm370_vm2, %v1458_v38  ;;  %2025 = vmatprep.mubr.msk.f32.mxu1 %vm2276_vm1, %v2275_v14  ;;  %v2077_v38 = vpack.c.bf16 %v1723_v37, %v1722_v31 }
 0x5a6   :  { %2033 = vmatprep.subr.mxu1 %v2275_v14 }
 0x5a8   :  { %2026 = vmatmul.mubr.msk.f32.vlgmr.msra.gmra.mrb[18].mxu1 %vm370_vm2, %v1456_v40 }
 0x5a9   :  { %2035 = vmatprep.mubr.msk.f32.mxu1 %vm2276_vm1, %v2275_v14  ;;  %v861_v14 = vsel %vm370_vm2, %v2524_v8, 0.0 }
 0x665   :  { %v2577_v41 = vpop.f32.mrb[10].mxu0 }
 0x666   :  { %v2012_v43 = vpop.f32.mrb[11].mxu0 }
 0x669   :  { %v1451_v45 = vpop.f32.mrb[12].mxu0 }
 0x66a   :  { %v2022_v46 = vpop.f32.mrb[13].mxu0  ;;  %v1533_v47 = vsel %vm370_vm2, %v1451_v45, -inf }
 0x66b   :  { %1534 = vmax.xlane.f32.xlu1 %v1533_v47 }
 0x677   :  { %v1358_v48 = vpop.f32.mrb[16].mxu1 }
 0x678   :  { %v2017_v49 = vpop.f32.mrb[17].mxu1 }
 0x679   :  { %v1866_v49 = vld [vmem:[%s2638_s8] ss:$0 sm:$0xff] }
 0x67b   :  { %v1529_v50 = vpop.f32.mrb[18].mxu1 }
 0x67c   :  { %v2027_v51 = vpop.f32.mrb[19].mxu1  ;;  %1627 = vrot.lane.b32.xlu1 %v2475_v42, %s2279_s11  ;;  %v1536_v52 = vsel %vm370_vm2, %v1529_v50, -inf }
 0x67d   :  { %1537 = vmax.xlane.f32.xlu0 %v1536_v52 }
 0x693   :  { %1551 = vrot.lane.b32.xlu0 %v2477_v44, %s2279_s11 }
 0x6a0   :  { %862 = vadd.xlane.f32.xlu1 %v861_v14 }
 0x6a4   :  { %1208 = vadd.xlane.f32.xlu1 %v1207_v53 }
 0x6b2   :  { %865 = vadd.xlane.f32.xlu0 %v864_v54 }
 0x6b6   :  { %1205 = vadd.xlane.f32.xlu0 %v1204_v57 }
 0x6f8   :  { %v1535_v42 = vpop.xlane.xlu1 %1534 }
 0x6f9   :  { %v1539_v58 = vsub.f32 %v1451_v45, %v1535_v42 }
 0x6fb   :  { %v1541_v59 = vmul.f32 1.442695, %v1539_v58 }
 0x6fc   :  { %v1628_v61 = vpop.permute.xlu1 %1627 }
 0x6fd   :  { %2108 = vpow2.f32 %v1541_v59  ;;  %2034 = vmatpush3.msra.mxu1 %v1628_v61 }
 0x707   :  { %v2109_v44 = vpop.eup %2108 }
 0x708   :  { %v1545_v63 = vsel %vm370_vm2, %v2109_v44, 0.0 }
 0x709   :  { %1546 = vadd.xlane.f32.xlu0 %v1545_v63 }
 0x70a   :  { %v1538_v0 = vpop.xlane.xlu0 %1537 }
 0x70b   :  { %v1540_v1 = vsub.f32 %v1529_v50, %v1538_v0 }
 0x70d   :  { %v1543_v3 = vmul.f32 1.442695, %v1540_v1  ;;  %536 = vadd.xlane.f32.xlu0 %v535_v2 }
 0x70e   :  { %v1552_v4 = vpop.permute.xlu0 %1551 }
 0x70f   :  { %2110 = vpow2.f32 %v1543_v3  ;;  %2029 = vmatpush3.msra.mxu0 %v1552_v4 }
 0x710   :  { %2031 = vmatmul.mubr.msk.f32.vlgmr.msra.gmra.mrb[14].mxu0 %vm370_vm2, %v2109_v44 }
 0x719   :  { %v2111_v5 = vpop.eup %2110 }
 0x71a   :  { %2036 = vmatmul.mubr.msk.f32.vlgmr.msra.gmra.mrb[20].mxu1 %vm370_vm2, %v2111_v5  ;;  %v1548_v6 = vsel %vm370_vm2, %v2111_v5, 0.0 }
 0x71b   :  { %1549 = vadd.xlane.f32.xlu1 %v1548_v6 }
 0x71f   :  { %539 = vadd.xlane.f32.xlu1 %v538_v7 }
 0x72d   :  { %v863_v8 = vpop.xlane.xlu1 %862 }
 0x72e   :  { %2112 = vrcp.f32 %v863_v8 }
 0x731   :  { %v1209_v55 = vpop.xlane.xlu1 %1208 }
 0x732   :  { %2114 = vrcp.f32 %v1209_v55 }
 0x738   :  { %v2113_v9 = vpop.eup %2112 }
 0x739   :  { %v1023_v10 = vmul.f32 %v2113_v9, %v2549_v19 }
 0x73b   :  { %1027 = vrot.lane.b32.xlu0 %v1023_v10, %s2271_s22 }
 0x73c   :  { %v2115_v11 = vpop.eup %2114 }
 0x73d   :  { %v1365_v12 = vmul.f32 %v2115_v11, %v1358_v48 }
 0x73f   :  { %v866_v13 = vpop.xlane.xlu0 %865  ;;  %1370 = vrot.lane.b32.xlu0 %v1365_v12, %s2280_s13 }
 0x740   :  { %2116 = vrcp.f32 %v866_v13 }
 0x743   :  { %v1206_v15 = vpop.xlane.xlu0 %1205 }
 0x744   :  { %2118 = vrcp.f32 %v1206_v15 }
 0x74a   :  { %v2117_v16 = vpop.eup %2116 }
 0x74b   :  { %v1024_v56 = vmul.f32 %v2117_v16, %v2552_v24 }
 0x74d   :  { %1029 = vrot.lane.b32.xlu1 %v1024_v56, %s2271_s22 }
 0x74e   :  { %v2119_v17 = vpop.eup %2118 }
 0x74f   :  { %v1364_v18 = vmul.f32 %v2119_v17, %v2577_v41 }
 0x751   :  { %1368 = vrot.lane.b32.xlu1 %v1364_v18, %s2280_s13 }
 0x796   :  { %v1547_v19 = vpop.xlane.xlu0 %1546 }
 0x79a   :  { %v537_v20 = vpop.xlane.xlu0 %536 }
 0x79b   :  { %2120 = vrcp.f32 %v537_v20 }
 0x7a5   :  { %v2121_v21 = vpop.eup %2120 }
 0x7a6   :  { %v689_v22 = vmul.f32 %v2121_v21, %v2509_v60  ;;  %v1720_v60 = vld [vmem:[#allocation11] sm:$0xff] }
 0x7a7   :  { %v2073_v35 = vpack.c.bf16 %v1721_v34, %v1720_v60 }
 0x7a8   :  { %691 = vst.msk [vmem:[#allocation2] sm:$0xff] %vm370_vm2, %v689_v22  ;;  %v1550_v23 = vpop.xlane.xlu1 %1549 }
 0x7a9   :  { %2074 = vmatprep.subr.bf16.mxu0 %v2073_v35 }
 0x7aa   :  { %2076 = vmatpush3.bf16.msra.mxu0 %v2073_v35 }
 0x7ab   :  { %2078 = vmatprep.subr.bf16.mxu0 %v2077_v38 }
 0x7ac   :  { %v540_v25 = vpop.xlane.xlu1 %539 }
 0x7ad   :  { %2122 = vrcp.f32 %v540_v25  ;;  %v1028_v26 = vpop.permute.xlu0 %1027 }
 0x7ae   :  { %1034 = vst.msk [vmem:[#allocation2] sm:$0xff] %vm1033_vm3, %v1028_v26  ;;  %2124 = vrcp.f32 %v1547_v19  ;;  %2080 = vmatpush3.bf16.msra.mxu0 %v2077_v38 }
 0x7af   :  { %2126 = vrcp.f32 %v1550_v23 }
 0x7b1   :  { %v1371_v30 = vpop.permute.xlu0 %1370 }
 0x7b7   :  { %v2123_v24 = vpop.eup %2122 }
 0x7b8   :  { %v690_v27 = vmul.f32 %v2123_v24, %v2511_v62  ;;  %v2125_v36 = vpop.eup %2124 }
 0x7b9   :  { %v2127_v39 = vpop.eup %2126 }
 0x7ba   :  { %692 = vst.msk [vmem:[#allocation2 + $0x8] sm:$0xff] %vm370_vm2, %v690_v27 }
 0x7bf   :  { %v1030_v28 = vpop.permute.xlu1 %1029 }
 0x7c0   :  { %1035 = vst.msk [vmem:[#allocation2 + $0x8] sm:$0xff] %vm1033_vm3, %v1030_v28 }
 0x7c1   :  { %1376 = vst.msk [vmem:[#allocation2 + $0x8] sm:$0xff] %vm1374_vm4, %v1371_v30 }
 0x7c3   :  { %v1369_v33 = vpop.permute.xlu1 %1368 }
 0x7c4   :  { %1375 = vst.msk [vmem:[#allocation2] sm:$0xff] %vm1374_vm4, %v1369_v33 }
 0x7e3   :  { %v1623_v29 = vpop.f32.mrb[14].mxu0 }
 0x7e4   :  { %v1705_v32 = vmul.f32 %v2125_v36, %v1623_v29  ;;  %v2032_v62 = vpop.f32.mrb[15].mxu0 }
 0x7e6   :  { %1709 = vrot.lane.b32.xlu1 %v1705_v32, %s2281_s1 }
 0x7ed   :  { %v1699_v40 = vpop.f32.mrb[20].mxu1 }
 0x7ee   :  { %v1706_v41 = vmul.f32 %v2127_v39, %v1699_v40  ;;  %v2037_v43 = vpop.f32.mrb[21].mxu1 }
 0x7f0   :  { %1711 = vrot.lane.b32.xlu0 %v1706_v41, %s2281_s1 }
 0x858   :  { %v1710_v45 = vpop.permute.xlu1 %1709 }
 0x859   :  { %1716 = vst.msk [vmem:[#allocation2] sm:$0xff] %vm1715_vm5, %v1710_v45 }
 0x860   :  { %v1718_v46 = vld [vmem:[#allocation2] sm:$0xff] }
 0x861   :  { %2046 = vmatprep.mubr.msk.f32.mxu0 %vm114_vm0, %v1718_v46 }
 0x862   :  { %v1712_v47 = vpop.permute.xlu0 %1711 }
 0x863   :  { %1717 = vst.msk [vmem:[#allocation2 + $0x8] sm:$0xff] %vm1715_vm5, %v1712_v47 }
 0x86a   :  { %v1719_v48 = vld [vmem:[#allocation2 + $0x8] sm:$0xff] }
 0x86b   :  { %2047 = vmatmul.mubr.msk.f32.vlgmr.msra.gmra.mrb[16].mxu0 %vm114_vm0, %v1719_v48 }
 0x93e   :  { %v2048_v50 = vpop.f32.mrb[16].mxu0 }
 0x93f   :  { %v1809_v51 = vadd.f32 %v2048_v50, %v1866_v49  ;;  %v1803_v52 = vpop.f32.mrb[17].mxu0 }
 0x940   :  { %v1804_v14 = vadd.f32 %v1866_v49, %v1803_v52 }
 0x941   :  { %1813 = vst.msk [vmem:[#allocation12 + $0x8] sm:$0xff] %vm114_vm0, %v1809_v51 }
 0x942   :  { %1812 = vst.msk [vmem:[#allocation12] sm:$0xff] %vm114_vm0, %v1804_v14 }
 0x943   :  { %2249 = shalt.err (!%p2246_p2)
}
 0x944   :  { %s2250_s19 = scalar_lea.hbm %s2639_s9, 256 }
 0x945   :  { %p2251_p3 = scmp.ne.s32.totalorder %s2639_s9, %s2250_s19  ;;  %p2254_p4 = scmp.lt.u32.totalorder %s2250_s19, %s2639_s9 }
 0x947   :  { %p2256_p5 = pnand %p2254_p4, %p2251_p3 }
 0x949   :  { %2259 = shalt.err (!%p2256_p5)
}
 0x94a   :  { %1825 = dma.vmem_to_hbm [thread:$0]  %s1820_s15, 256, %s2639_s9, [#allocation5], %s2270_s21, %s2270_s21, %s2271_s22  }
 0x94b   :  { %2266 = dma.done.wait [#allocation5], 256  }
 0x94c   :  { %2267 = vsyncadd [#allocation5], 4294967040 }
 0x94d   :  { %1829 = vsyncpa [#allocation4], 1 }
 0x94e   :  { %1830 = vsyncpa [#allocation7], 1 }
 0x94f   :  { %1831 = vsyncpa [#allocation10], 1 }
 0x950   :  { %1832 = vsyncpa [#allocation5], 1 }

</bundles_post_ra>
